<compile_context>
chip_gen: v7x
topology: tpu7x:2x2x1
jax: 0.10.0
libtpu: 0.0.40
codegen_flags: <defaults>
</compile_context>

<pallas_src>
import math
from functools import partial

import jax
import jax.numpy as jnp
from jax.experimental import pallas as pl
from jax.experimental.pallas import tpu as pltpu


def _layernorm(x, g, b, eps):
    mu = jnp.mean(x, axis=-1, keepdims=True)
    var = jnp.mean((x - mu) ** 2, axis=-1, keepdims=True)
    return (x - mu) * jax.lax.rsqrt(var + eps) * g + b


def _gelu_exact(x):
    # nn.GELU() default: 0.5*x*(1+erf(x/sqrt(2)))
    return 0.5 * x * (1.0 + jax.lax.erf(x * 0.7071067811865476))


def block_kernel(x_ref,
                 ln1_g_ref, ln1_b_ref,
                 wqkv_ref, bqkv_ref,
                 wo_ref, bo_ref,
                 ln2_g_ref, ln2_b_ref,
                 w1_ref, b1_ref, w2_ref, b2_ref,
                 out_ref, kv_ref,
                 *, n_head, eps, q_tile):
    S, E = x_ref.shape[1], x_ref.shape[2]
    Dh = E // n_head
    cdt = wqkv_ref.dtype            # MXU operand dtype (bf16 default); accumulation is f32

    # Input may be bf16 (halves x DMA); LayerNorm math stays f32.
    x = x_ref[0].astype(jnp.float32)                       # (S, E)

    # ----- LayerNorm 1 (f32, VPU) -----
    h1 = _layernorm(x, ln1_g_ref[...], ln1_b_ref[...], eps)

    # ----- fused QKV projection: one MXU pass, lane-dense N = 3E -----
    # (1/sqrt(Dh) is pre-folded into the q columns of wqkv/bqkv in prepare_params.)
    qkv = jnp.dot(h1.astype(cdt), wqkv_ref[...],
                  preferred_element_type=jnp.float32) + bqkv_ref[...]
    q = qkv[:, :E]
    k = qkv[:, E:2 * E]
    v = qkv[:, 2 * E:]

    # ----- present: two lane-dense (S, E) stores, bf16 by default -----
    kv_ref[0, 0] = k.astype(kv_ref.dtype)
    kv_ref[1, 0] = v.astype(kv_ref.dtype)

    # ----- masked multi-head attention: flash-style (q_tile x kv_tile) blocks with
    #       online softmax; fully-masked kv tiles are skipped (causal) -----
    TQ = q_tile
    NQ = S // TQ
    NEG = jnp.float32(-10000.0)     # masked_bias from the module

    head_cols = []
    for h in range(n_head):
        sl = slice(h * Dh, (h + 1) * Dh)
        q_h = q[:, sl].astype(cdt)                          # (S, Dh)
        k_h = k[:, sl].astype(cdt)
        v_h = v[:, sl].astype(cdt)
        q_rows = []
        for qi in range(NQ):
            q_t = q_h[qi * TQ:(qi + 1) * TQ, :]             # (TQ, Dh)
            m_i = jnp.full((TQ, 1), -1e30, jnp.float32)
            l_i = jnp.zeros((TQ, 1), jnp.float32)
            acc = jnp.zeros((TQ, Dh), jnp.float32)
            for ki in range(qi + 1):                        # causal tile skip
                k_t = k_h[ki * TQ:(ki + 1) * TQ, :]
                v_t = v_h[ki * TQ:(ki + 1) * TQ, :]
                s = jnp.dot(q_t, k_t.T, preferred_element_type=jnp.float32)  # (TQ, TQ)
                if ki == qi:
                    # diagonal tile: causal mask as a fused broadcast-compare
                    r = jax.lax.broadcasted_iota(jnp.int32, (TQ, 1), 0)
                    c = jax.lax.broadcasted_iota(jnp.int32, (1, TQ), 1)
                    s = jnp.where(c <= r, s, NEG)
                m_new = jnp.maximum(m_i, jnp.max(s, axis=-1, keepdims=True))
                alpha = jnp.exp(m_i - m_new)
                p = jnp.exp(s - m_new)
                l_i = alpha * l_i + jnp.sum(p, axis=-1, keepdims=True)
                acc = alpha * acc + jnp.dot(p.astype(cdt), v_t,
                                            preferred_element_type=jnp.float32)
                m_i = m_new
            q_rows.append(acc * pl.reciprocal(l_i, approx=True))
        head_cols.append(q_rows[0] if NQ == 1 else jnp.concatenate(q_rows, axis=0))
    attn = jnp.concatenate(head_cols, axis=-1)              # (S, E), lane dense

    attn_out = (jnp.dot(attn.astype(cdt), wo_ref[...],
                        preferred_element_type=jnp.float32) + bo_ref[...])

    # ----- residual 1 (relative to post-LN1 h1, per the PyTorch module) -----
    h2 = h1 + attn_out

    # ----- LayerNorm 2 -----
    h3 = _layernorm(h2, ln2_g_ref[...], ln2_b_ref[...], eps)

    # ----- MLP -----
    a = _gelu_exact(jnp.dot(h3.astype(cdt), w1_ref[...],
                            preferred_element_type=jnp.float32) + b1_ref[...])
    m_out = jnp.dot(a.astype(cdt), w2_ref[...],
                    preferred_element_type=jnp.float32) + b2_ref[...]

    # ----- residual 2 (relative to post-LN2 h3, per the PyTorch module) -----
    out_ref[0] = (h3 + m_out).astype(out_ref.dtype)


def prepare_params(params, *, n_head, compute_dtype=jnp.bfloat16):
    """One-time parameter preparation (call at load time, NOT per forward):
    fuse QKV, fold the 1/sqrt(Dh) attention scale into the q columns, and cast the
    weight matrices to the MXU compute dtype (bf16 default on all generations).
    LayerNorm params and biases stay f32 (added post-accumulation)."""
    E = params["wq"].shape[0]
    Dh = E // n_head
    scale = 1.0 / math.sqrt(Dh)
    cdt = jnp.dtype(compute_dtype)
    wqkv = jnp.concatenate([params["wq"] * scale, params["wk"], params["wv"]], axis=1)
    bqkv = jnp.concatenate([params["bq"] * scale, params["bk"], params["bv"]], axis=1)
    f32 = jnp.float32
    return {
        "ln1_g": params["ln1_g"].astype(f32), "ln1_b": params["ln1_b"].astype(f32),
        "wqkv": wqkv.astype(cdt), "bqkv": bqkv.astype(f32),
        "wo": params["wo"].astype(cdt), "bo": params["bo"].astype(f32),
        "ln2_g": params["ln2_g"].astype(f32), "ln2_b": params["ln2_b"].astype(f32),
        "w1": params["w1"].astype(cdt), "b1": params["b1"].astype(f32),
        "w2": params["w2"].astype(cdt), "b2": params["b2"].astype(f32),
    }


def present_to_gpt2(kv, n_head):
    """Lane-dense cache (2, B, S, E) -> module layout (2, B, H, S, Dh).
    Only call this when a consumer actually needs the module layout; it costs a
    full HBM read+write pass over the present tensor."""
    two, B, S, E = kv.shape
    Dh = E // n_head
    return kv.reshape(2, B, S, n_head, Dh).transpose(0, 1, 3, 2, 4)


def gpt2_block(x, p, *, n_head, eps=1e-5, kv_dtype=jnp.bfloat16, q_tile=None):
    """x: (B, S, E) activations (bf16 recommended). p: output of prepare_params().
    Returns (hidden_states_out (B,S,E) in x.dtype, present (2,B,S,E) in kv_dtype)."""
    B, S, E = x.shape
    inner = p["w1"].shape[1]
    if q_tile is None:
        q_tile = 128 if S % 128 == 0 else S
    assert S % q_tile == 0, "q_tile must divide the sequence length"

    # Generation-aware VMEM budget: ~3/4 of physical VMEM (≈96 MiB on v5e/v6e's
    # 128 MiB, ≈48 MiB on v7x's 64 MiB).
    try:
        vmem_cap = int(pltpu.get_tpu_info().vmem_capacity_bytes)
    except Exception:
        vmem_cap = 64 * 1024 * 1024
    vmem_limit = max(32 * 1024 * 1024, (vmem_cap * 3) // 4)

    # Constant-index weights/biases: single-buffered (they never change across the
    # batch grid, default double-buffering just doubles their VMEM footprint).
    def wspec(shape):
        n = len(shape)
        return pl.BlockSpec(shape, lambda b, _n=n: (0,) * _n,
                            pipeline_mode=pl.Buffered(1))

    in_specs = [
        pl.BlockSpec((1, S, E), lambda b: (b, 0, 0)),   # x: per-batch block (pipelined)
        wspec((1, E)), wspec((1, E)),                   # ln1 g/b
        wspec((E, 3 * E)), wspec((1, 3 * E)),           # fused wqkv, bqkv
        wspec((E, E)), wspec((1, E)),                   # wo, bo
        wspec((1, E)), wspec((1, E)),                   # ln2 g/b
        wspec((E, inner)), wspec((1, inner)),           # w1, b1
        wspec((inner, E)), wspec((1, E)),               # w2, b2
    ]
    out_specs = [
        pl.BlockSpec((1, S, E), lambda b: (b, 0, 0)),           # hidden_states out
        pl.BlockSpec((2, 1, S, E), lambda b: (0, b, 0, 0)),     # lane-dense (k, v) slabs
    ]
    out_shape = [
        jax.ShapeDtypeStruct((B, S, E), x.dtype),
        jax.ShapeDtypeStruct((2, B, S, E), jnp.dtype(kv_dtype)),
    ]

    # Advisory cost estimate so XLA schedules neighbouring ops around this call.
    H = n_head
    flops = B * (8 * S * E * E + 2 * S * S * E + 4 * S * E * inner)
    transc = B * (H * S * S // 2 + S * inner + 4 * S)
    w_bytes = sum(int(v.size) * v.dtype.itemsize for v in p.values())
    io_bytes = (int(x.size) * x.dtype.itemsize                       # x in
                + B * S * E * jnp.dtype(x.dtype).itemsize            # out
                + 2 * B * S * E * jnp.dtype(kv_dtype).itemsize)      # present
    cost = pl.CostEstimate(flops=int(flops), transcendentals=int(transc),
                           bytes_accessed=int(io_bytes + w_bytes))

    kernel = partial(block_kernel, n_head=n_head, eps=eps, q_tile=q_tile)
    out, kv = pl.pallas_call(
        kernel,
        grid_spec=pltpu.PrefetchScalarGridSpec(
            num_scalar_prefetch=0,
            grid=(B,),
            in_specs=in_specs,
            out_specs=out_specs,
        ),
        out_shape=out_shape,
        compiler_params=pltpu.CompilerParams(
            # batch rows are fully independent -> shard across both v7x TensorCores
            dimension_semantics=("parallel",),
            vmem_limit_bytes=int(vmem_limit),
        ),
        cost_estimate=cost,
    )(x, p["ln1_g"], p["ln1_b"], p["wqkv"], p["bqkv"], p["wo"], p["bo"],
      p["ln2_g"], p["ln2_b"], p["w1"], p["b1"], p["w2"], p["b2"])
    return out, kv


# ---------------------- pure-JAX reference (for verification) ----------------------
def ref_block(x, p, n_head, eps=1e-5):
    def ln(z, g, b):
        mu = z.mean(-1, keepdims=True)
        var = ((z - mu) ** 2).mean(-1, keepdims=True)
        return (z - mu) / jnp.sqrt(var + eps) * g + b

    B, S, E = x.shape
    Dh = E // n_head
    h1 = ln(x, p["ln1_g"], p["ln1_b"])
    q = h1 @ p["wq"] + p["bq"]
    k = h1 @ p["wk"] + p["bk"]
    v = h1 @ p["wv"] + p["bv"]
    qh = q.reshape(B, S, n_head, Dh).transpose(0, 2, 1, 3)
    kh = k.reshape(B, S, n_head, Dh).transpose(0, 2, 1, 3)
    vh = v.reshape(B, S, n_head, Dh).transpose(0, 2, 1, 3)
    w = jnp.einsum('bhqd,bhkd->bhqk', qh, kh) / math.sqrt(Dh)
    mask = jnp.tril(jnp.ones((S, S), bool))
    w = jnp.where(mask, w, -10000.0)
    w = jax.nn.softmax(w, axis=-1)
    o = jnp.einsum('bhqk,bhkd->bhqd', w, vh).transpose(0, 2, 1, 3).reshape(B, S, E)
    attn_out = o @ p["wo"] + p["bo"]
    present = jnp.stack([kh, vh])
    h2 = h1 + attn_out
    h3 = ln(h2, p["ln2_g"], p["ln2_b"])
    a = jax.nn.gelu(h3 @ p["w1"] + p["b1"], approximate=False)
    m = a @ p["w2"] + p["b2"]
    return h3 + m, present


if __name__ == "__main__":
    # NOTE: toy shapes for the correctness check only (S=16 with q_tile=8 exercises
    # the flash tiling, causal tile skipping and diagonal-tile masking); perf tuning
    # must be done at production shapes (S multiple of 128, E >= 768).
    B, S, E, H = 2, 16, 32, 4       # n_ctx = S = 16, n_embd = 32, n_head = 4
    INNER = 4 * E                   # n_inner = None -> 4 * n_embd
    EPS = 1e-5                      # layer_norm_epsilon
    QT = 8                          # q/kv tile for the flash loop

    key = jax.random.PRNGKey(0)
    ks = jax.random.split(key, 16)

    def nrm(k, shape, std=0.02):
        return (std * jax.random.normal(k, shape)).astype(jnp.float32)

    # Linear weights are stored pre-transposed to (in, out) so the kernel does x @ W + b.
    params = {
        "ln1_g": jnp.ones((1, E), jnp.float32),
        "ln1_b": jnp.zeros((1, E), jnp.float32),
        "wq": nrm(ks[0], (E, E)), "bq": nrm(ks[1], (1, E)),
        "wk": nrm(ks[2], (E, E)), "bk": nrm(ks[3], (1, E)),
        "wv": nrm(ks[4], (E, E)), "bv": nrm(ks[5], (1, E)),
        "wo": nrm(ks[6], (E, E)), "bo": nrm(ks[7], (1, E)),
        "ln2_g": jnp.ones((1, E), jnp.float32),
        "ln2_b": jnp.zeros((1, E), jnp.float32),
        "w1": nrm(ks[8], (E, INNER)), "b1": nrm(ks[9], (1, INNER)),
        "w2": nrm(ks[10], (INNER, E)), "b2": nrm(ks[11], (1, E)),
    }

    x = jax.random.normal(ks[12], (B, S, E), jnp.float32)

    ref_out, ref_present = ref_block(x, params, H, EPS)

    # ---- f32 parity path (f32 weights / kv; approx reciprocal -> slightly looser tol)
    p_f32 = prepare_params(params, n_head=H, compute_dtype=jnp.float32)
    out, kv = gpt2_block(x, p_f32, n_head=H, eps=EPS,
                         kv_dtype=jnp.float32, q_tile=QT)
    jax.block_until_ready(out)
    jax.block_until_ready(kv)
    assert jnp.allclose(out, ref_out, atol=5e-3, rtol=5e-3), "output mismatch (f32)"
    assert jnp.allclose(present_to_gpt2(kv, H), ref_present,
                        atol=1e-3, rtol=1e-3), "present mismatch (f32)"

    # ---- default fast path: bf16 activations in/out, bf16 weights on the MXU,
    # bf16 present/kv (f32 accumulation everywhere) — looser tolerance.
    p_bf = prepare_params(params, n_head=H)                    # bf16 default
    out_bf, kv_bf = gpt2_block(x.astype(jnp.bfloat16), p_bf, n_head=H, eps=EPS,
                               q_tile=QT)
    jax.block_until_ready(out_bf)
    jax.block_until_ready(kv_bf)
    assert jnp.allclose(out_bf.astype(jnp.float32), ref_out,
                        atol=3e-2, rtol=3e-2), "output mismatch (bf16)"
    assert jnp.allclose(present_to_gpt2(kv_bf, H).astype(jnp.float32), ref_present,
                        atol=2e-2, rtol=2e-2), "present mismatch (bf16)"

    print("KERNEL_OK")
</pallas_src>

<mosaic_0001>
module attributes {stable_mosaic.version = 11 : i64} {
  func.func @block_kernel(%arg0: i32, %arg1: memref<1x16x32xf32, #tpu.memory_space<vmem>>, %arg2: memref<1x32xf32, #tpu.memory_space<vmem>>, %arg3: memref<1x32xf32, #tpu.memory_space<vmem>>, %arg4: memref<32x96xf32, #tpu.memory_space<vmem>>, %arg5: memref<1x96xf32, #tpu.memory_space<vmem>>, %arg6: memref<32x32xf32, #tpu.memory_space<vmem>>, %arg7: memref<1x32xf32, #tpu.memory_space<vmem>>, %arg8: memref<1x32xf32, #tpu.memory_space<vmem>>, %arg9: memref<1x32xf32, #tpu.memory_space<vmem>>, %arg10: memref<32x128xf32, #tpu.memory_space<vmem>>, %arg11: memref<1x128xf32, #tpu.memory_space<vmem>>, %arg12: memref<128x32xf32, #tpu.memory_space<vmem>>, %arg13: memref<1x32xf32, #tpu.memory_space<vmem>>, %arg14: memref<1x16x32xf32, #tpu.memory_space<vmem>>, %arg15: memref<2x1x16x32xf32, #tpu.memory_space<vmem>>) attributes {dimension_semantics = [#tpu.dimension_semantics<parallel>], iteration_bounds = array<i64: 2>, scalar_prefetch = 0 : i64, scratch_operands = 0 : i64, tpu.core_type = #tpu.core_type<tc>, window_params = [{transform_indices = @transform_0, window_bounds = array<i64: 1, 16, 32>}, {pipeline_mode = #tpu.pipeline_mode<synchronous>, transform_indices = @transform_1, window_bounds = array<i64: 1, 32>}, {pipeline_mode = #tpu.pipeline_mode<synchronous>, transform_indices = @transform_2, window_bounds = array<i64: 1, 32>}, {pipeline_mode = #tpu.pipeline_mode<synchronous>, transform_indices = @transform_3, window_bounds = array<i64: 32, 96>}, {pipeline_mode = #tpu.pipeline_mode<synchronous>, transform_indices = @transform_4, window_bounds = array<i64: 1, 96>}, {pipeline_mode = #tpu.pipeline_mode<synchronous>, transform_indices = @transform_5, window_bounds = array<i64: 32, 32>}, {pipeline_mode = #tpu.pipeline_mode<synchronous>, transform_indices = @transform_6, window_bounds = array<i64: 1, 32>}, {pipeline_mode = #tpu.pipeline_mode<synchronous>, transform_indices = @transform_7, window_bounds = array<i64: 1, 32>}, {pipeline_mode = #tpu.pipeline_mode<synchronous>, transform_indices = @transform_8, window_bounds = array<i64: 1, 32>}, {pipeline_mode = #tpu.pipeline_mode<synchronous>, transform_indices = @transform_9, window_bounds = array<i64: 32, 128>}, {pipeline_mode = #tpu.pipeline_mode<synchronous>, transform_indices = @transform_10, window_bounds = array<i64: 1, 128>}, {pipeline_mode = #tpu.pipeline_mode<synchronous>, transform_indices = @transform_11, window_bounds = array<i64: 128, 32>}, {pipeline_mode = #tpu.pipeline_mode<synchronous>, transform_indices = @transform_12, window_bounds = array<i64: 1, 32>}, {transform_indices = @transform_13, window_bounds = array<i64: 1, 16, 32>}, {transform_indices = @transform_14, window_bounds = array<i64: 2, 1, 16, 32>}]} {
    %c0 = arith.constant 0 : index
    %c0_0 = arith.constant 0 : index
    %c0_1 = arith.constant 0 : index
    %0 = vector.load %arg1[%c0, %c0_0, %c0_1] : memref<1x16x32xf32, #tpu.memory_space<vmem>>, vector<1x16x32xf32>
    %1 = vector.shape_cast %0 : vector<1x16x32xf32> to vector<16x32xf32>
    %c0_2 = arith.constant 0 : index
    %c0_3 = arith.constant 0 : index
    %2 = vector.load %arg2[%c0_2, %c0_3] : memref<1x32xf32, #tpu.memory_space<vmem>>, vector<1x32xf32>
    %c0_4 = arith.constant 0 : index
    %c0_5 = arith.constant 0 : index
    %3 = vector.load %arg3[%c0_4, %c0_5] : memref<1x32xf32, #tpu.memory_space<vmem>>, vector<1x32xf32>
    %cst = arith.constant dense<0.000000e+00> : vector<16xf32>
    %4 = vector.multi_reduction <add>, %1, %cst [1] : vector<16x32xf32> to vector<16xf32>
    %5 = vector.shape_cast %4 : vector<16xf32> to vector<16x1xf32>
    %cst_6 = arith.constant 3.200000e+01 : f32
    %6 = vector.broadcast %cst_6 : f32 to vector<16x1xf32>
    %7 = arith.divf %5, %6 : vector<16x1xf32>
    %8 = vector.broadcast %7 : vector<16x1xf32> to vector<16x32xf32>
    %9 = arith.subf %1, %8 : vector<16x32xf32>
    %10 = arith.mulf %9, %9 : vector<16x32xf32>
    %cst_7 = arith.constant dense<0.000000e+00> : vector<16xf32>
    %11 = vector.multi_reduction <add>, %10, %cst_7 [1] : vector<16x32xf32> to vector<16xf32>
    %12 = vector.shape_cast %11 : vector<16xf32> to vector<16x1xf32>
    %cst_8 = arith.constant 3.200000e+01 : f32
    %13 = vector.broadcast %cst_8 : f32 to vector<16x1xf32>
    %14 = arith.divf %12, %13 : vector<16x1xf32>
    %15 = vector.broadcast %7 : vector<16x1xf32> to vector<16x32xf32>
    %16 = arith.subf %1, %15 : vector<16x32xf32>
    %cst_9 = arith.constant 9.99999974E-6 : f32
    %17 = vector.broadcast %cst_9 : f32 to vector<16x1xf32>
    %18 = arith.addf %14, %17 : vector<16x1xf32>
    %19 = math.rsqrt %18 : vector<16x1xf32>
    %20 = vector.broadcast %19 : vector<16x1xf32> to vector<16x32xf32>
    %21 = arith.mulf %16, %20 : vector<16x32xf32>
    %22 = vector.broadcast %2 : vector<1x32xf32> to vector<16x32xf32>
    %23 = arith.mulf %21, %22 : vector<16x32xf32>
    %24 = vector.broadcast %3 : vector<1x32xf32> to vector<16x32xf32>
    %25 = arith.addf %23, %24 : vector<16x32xf32>
    %c0_10 = arith.constant 0 : index
    %c0_11 = arith.constant 0 : index
    %26 = vector.load %arg4[%c0_10, %c0_11] : memref<32x96xf32, #tpu.memory_space<vmem>>, vector<32x96xf32>
    %cst_12 = arith.constant dense<0.000000e+00> : vector<16x96xf32>
    %27 = tpu.matmul %25, %26, %cst_12 {dimension_numbers = #tpu.dot_dimension_numbers<[1], [0], [0], [1], [0, 0, 1, 1], [], []>} : vector<16x32xf32>, vector<32x96xf32>, vector<16x96xf32> -> vector<16x96xf32>
    %c0_13 = arith.constant 0 : index
    %c0_14 = arith.constant 0 : index
    %28 = vector.load %arg5[%c0_13, %c0_14] : memref<1x96xf32, #tpu.memory_space<vmem>>, vector<1x96xf32>
    %29 = vector.broadcast %28 : vector<1x96xf32> to vector<16x96xf32>
    %30 = arith.addf %27, %29 : vector<16x96xf32>
    %31 = vector.extract_strided_slice %30 {offsets = [0, 0], sizes = [16, 32], strides = [1, 1]} : vector<16x96xf32> to vector<16x32xf32>
    %32 = vector.extract_strided_slice %30 {offsets = [0, 32], sizes = [16, 32], strides = [1, 1]} : vector<16x96xf32> to vector<16x32xf32>
    %33 = vector.extract_strided_slice %30 {offsets = [0, 64], sizes = [16, 32], strides = [1, 1]} : vector<16x96xf32> to vector<16x32xf32>
    %c0_15 = arith.constant 0 : index
    %c0_16 = arith.constant 0 : index
    %c0_17 = arith.constant 0 : index
    %c0_18 = arith.constant 0 : index
    %34 = vector.load %arg15[%c0_15, %c0_16, %c0_17, %c0_18] : memref<2x1x16x32xf32, #tpu.memory_space<vmem>>, vector<1x1x16x32xf32>
    %35 = vector.shape_cast %34 : vector<1x1x16x32xf32> to vector<16x32xf32>
    %36 = vector.shape_cast %32 : vector<16x32xf32> to vector<1x1x16x32xf32>
    tpu.vector_store %arg15[%c0_15, %c0_16, %c0_17, %c0_18], %36 {strides = array<i32>} : memref<2x1x16x32xf32, #tpu.memory_space<vmem>>, vector<1x1x16x32xf32>,
    %c1 = arith.constant 1 : index
    %c0_19 = arith.constant 0 : index
    %c0_20 = arith.constant 0 : index
    %c0_21 = arith.constant 0 : index
    %37 = vector.load %arg15[%c1, %c0_19, %c0_20, %c0_21] : memref<2x1x16x32xf32, #tpu.memory_space<vmem>>, vector<1x1x16x32xf32>
    %38 = vector.shape_cast %37 : vector<1x1x16x32xf32> to vector<16x32xf32>
    %39 = vector.shape_cast %33 : vector<16x32xf32> to vector<1x1x16x32xf32>
    tpu.vector_store %arg15[%c1, %c0_19, %c0_20, %c0_21], %39 {strides = array<i32>} : memref<2x1x16x32xf32, #tpu.memory_space<vmem>>, vector<1x1x16x32xf32>,
    %40 = vector.extract_strided_slice %31 {offsets = [0, 0], sizes = [16, 8], strides = [1, 1]} : vector<16x32xf32> to vector<16x8xf32>
    %41 = vector.extract_strided_slice %32 {offsets = [0, 0], sizes = [16, 8], strides = [1, 1]} : vector<16x32xf32> to vector<16x8xf32>
    %42 = vector.extract_strided_slice %33 {offsets = [0, 0], sizes = [16, 8], strides = [1, 1]} : vector<16x32xf32> to vector<16x8xf32>
    %43 = vector.extract_strided_slice %40 {offsets = [0, 0], sizes = [8, 8], strides = [1, 1]} : vector<16x8xf32> to vector<8x8xf32>
    %cst_22 = arith.constant -1.000000e+30 : f32
    %44 = vector.broadcast %cst_22 : f32 to vector<8x1xf32>
    %cst_23 = arith.constant 0.000000e+00 : f32
    %45 = vector.broadcast %cst_23 : f32 to vector<8x1xf32>
    %cst_24 = arith.constant 0.000000e+00 : f32
    %46 = vector.broadcast %cst_24 : f32 to vector<8x8xf32>
    %47 = vector.extract_strided_slice %41 {offsets = [0, 0], sizes = [8, 8], strides = [1, 1]} : vector<16x8xf32> to vector<8x8xf32>
    %48 = vector.extract_strided_slice %42 {offsets = [0, 0], sizes = [8, 8], strides = [1, 1]} : vector<16x8xf32> to vector<8x8xf32>
    %49 = tpu.transpose %47, [1, 0] : vector<8x8xf32> -> vector<8x8xf32>
    %cst_25 = arith.constant dense<0.000000e+00> : vector<8x8xf32>
    %50 = tpu.matmul %43, %49, %cst_25 {dimension_numbers = #tpu.dot_dimension_numbers<[1], [0], [0], [1], [0, 0, 1, 1], [], []>} : vector<8x8xf32>, vector<8x8xf32>, vector<8x8xf32> -> vector<8x8xf32>
    %51 = tpu.iota {dimensions = array<i32: 0>} : vector<8x1xi32>
    %52 = tpu.iota {dimensions = array<i32: 1>} : vector<1x8xi32>
    %53 = vector.broadcast %52 : vector<1x8xi32> to vector<8x8xi32>
    %54 = vector.broadcast %51 : vector<8x1xi32> to vector<8x8xi32>
    %55 = arith.cmpi sle, %53, %54 : vector<8x8xi32>
    %cst_26 = arith.constant -1.000000e+04 : f32
    %56 = vector.broadcast %cst_26 : f32 to vector<8x8xf32>
    %57 = arith.select %55, %50, %56 : vector<8x8xi1>, vector<8x8xf32>
    %cst_27 = arith.constant dense<0xFF800000> : vector<8xf32>
    %58 = vector.multi_reduction <maximumf>, %57, %cst_27 [1] : vector<8x8xf32> to vector<8xf32>
    %59 = vector.shape_cast %58 : vector<8xf32> to vector<8x1xf32>
    %60 = arith.maximumf %44, %59 : vector<8x1xf32>
    %61 = arith.subf %44, %60 : vector<8x1xf32>
    %62 = math.exp %61 : vector<8x1xf32>
    %63 = vector.broadcast %60 : vector<8x1xf32> to vector<8x8xf32>
    %64 = arith.subf %57, %63 : vector<8x8xf32>
    %65 = math.exp %64 : vector<8x8xf32>
    %66 = arith.mulf %62, %45 : vector<8x1xf32>
    %cst_28 = arith.constant dense<0.000000e+00> : vector<8xf32>
    %67 = vector.multi_reduction <add>, %65, %cst_28 [1] : vector<8x8xf32> to vector<8xf32>
    %68 = vector.shape_cast %67 : vector<8xf32> to vector<8x1xf32>
    %69 = arith.addf %66, %68 : vector<8x1xf32>
    %70 = vector.broadcast %62 : vector<8x1xf32> to vector<8x8xf32>
    %71 = arith.mulf %70, %46 : vector<8x8xf32>
    %cst_29 = arith.constant dense<0.000000e+00> : vector<8x8xf32>
    %72 = tpu.matmul %65, %48, %cst_29 {dimension_numbers = #tpu.dot_dimension_numbers<[1], [0], [0], [1], [0, 0, 1, 1], [], []>} : vector<8x8xf32>, vector<8x8xf32>, vector<8x8xf32> -> vector<8x8xf32>
    %73 = arith.addf %71, %72 : vector<8x8xf32>
    %74 = tpu.reciprocal %69 {approx = true} : vector<8x1xf32> -> vector<8x1xf32>
    %75 = vector.broadcast %74 : vector<8x1xf32> to vector<8x8xf32>
    %76 = arith.mulf %73, %75 : vector<8x8xf32>
    %77 = vector.extract_strided_slice %40 {offsets = [8, 0], sizes = [8, 8], strides = [1, 1]} : vector<16x8xf32> to vector<8x8xf32>
    %cst_30 = arith.constant -1.000000e+30 : f32
    %78 = vector.broadcast %cst_30 : f32 to vector<8x1xf32>
    %cst_31 = arith.constant 0.000000e+00 : f32
    %79 = vector.broadcast %cst_31 : f32 to vector<8x1xf32>
    %cst_32 = arith.constant 0.000000e+00 : f32
    %80 = vector.broadcast %cst_32 : f32 to vector<8x8xf32>
    %81 = vector.extract_strided_slice %41 {offsets = [0, 0], sizes = [8, 8], strides = [1, 1]} : vector<16x8xf32> to vector<8x8xf32>
    %82 = vector.extract_strided_slice %42 {offsets = [0, 0], sizes = [8, 8], strides = [1, 1]} : vector<16x8xf32> to vector<8x8xf32>
    %83 = tpu.transpose %81, [1, 0] : vector<8x8xf32> -> vector<8x8xf32>
    %cst_33 = arith.constant dense<0.000000e+00> : vector<8x8xf32>
    %84 = tpu.matmul %77, %83, %cst_33 {dimension_numbers = #tpu.dot_dimension_numbers<[1], [0], [0], [1], [0, 0, 1, 1], [], []>} : vector<8x8xf32>, vector<8x8xf32>, vector<8x8xf32> -> vector<8x8xf32>
    %cst_34 = arith.constant dense<0xFF800000> : vector<8xf32>
    %85 = vector.multi_reduction <maximumf>, %84, %cst_34 [1] : vector<8x8xf32> to vector<8xf32>
    %86 = vector.shape_cast %85 : vector<8xf32> to vector<8x1xf32>
    %87 = arith.maximumf %78, %86 : vector<8x1xf32>
    %88 = arith.subf %78, %87 : vector<8x1xf32>
    %89 = math.exp %88 : vector<8x1xf32>
    %90 = vector.broadcast %87 : vector<8x1xf32> to vector<8x8xf32>
    %91 = arith.subf %84, %90 : vector<8x8xf32>
    %92 = math.exp %91 : vector<8x8xf32>
    %93 = arith.mulf %89, %79 : vector<8x1xf32>
    %cst_35 = arith.constant dense<0.000000e+00> : vector<8xf32>
    %94 = vector.multi_reduction <add>, %92, %cst_35 [1] : vector<8x8xf32> to vector<8xf32>
    %95 = vector.shape_cast %94 : vector<8xf32> to vector<8x1xf32>
    %96 = arith.addf %93, %95 : vector<8x1xf32>
    %97 = vector.broadcast %89 : vector<8x1xf32> to vector<8x8xf32>
    %98 = arith.mulf %97, %80 : vector<8x8xf32>
    %cst_36 = arith.constant dense<0.000000e+00> : vector<8x8xf32>
    %99 = tpu.matmul %92, %82, %cst_36 {dimension_numbers = #tpu.dot_dimension_numbers<[1], [0], [0], [1], [0, 0, 1, 1], [], []>} : vector<8x8xf32>, vector<8x8xf32>, vector<8x8xf32> -> vector<8x8xf32>
    %100 = arith.addf %98, %99 : vector<8x8xf32>
    %101 = vector.extract_strided_slice %41 {offsets = [8, 0], sizes = [8, 8], strides = [1, 1]} : vector<16x8xf32> to vector<8x8xf32>
    %102 = vector.extract_strided_slice %42 {offsets = [8, 0], sizes = [8, 8], strides = [1, 1]} : vector<16x8xf32> to vector<8x8xf32>
    %103 = tpu.transpose %101, [1, 0] : vector<8x8xf32> -> vector<8x8xf32>
    %cst_37 = arith.constant dense<0.000000e+00> : vector<8x8xf32>
    %104 = tpu.matmul %77, %103, %cst_37 {dimension_numbers = #tpu.dot_dimension_numbers<[1], [0], [0], [1], [0, 0, 1, 1], [], []>} : vector<8x8xf32>, vector<8x8xf32>, vector<8x8xf32> -> vector<8x8xf32>
    %105 = tpu.iota {dimensions = array<i32: 0>} : vector<8x1xi32>
    %106 = tpu.iota {dimensions = array<i32: 1>} : vector<1x8xi32>
    %107 = vector.broadcast %106 : vector<1x8xi32> to vector<8x8xi32>
    %108 = vector.broadcast %105 : vector<8x1xi32> to vector<8x8xi32>
    %109 = arith.cmpi sle, %107, %108 : vector<8x8xi32>
    %cst_38 = arith.constant -1.000000e+04 : f32
    %110 = vector.broadcast %cst_38 : f32 to vector<8x8xf32>
    %111 = arith.select %109, %104, %110 : vector<8x8xi1>, vector<8x8xf32>
    %cst_39 = arith.constant dense<0xFF800000> : vector<8xf32>
    %112 = vector.multi_reduction <maximumf>, %111, %cst_39 [1] : vector<8x8xf32> to vector<8xf32>
    %113 = vector.shape_cast %112 : vector<8xf32> to vector<8x1xf32>
    %114 = arith.maximumf %87, %113 : vector<8x1xf32>
    %115 = arith.subf %87, %114 : vector<8x1xf32>
    %116 = math.exp %115 : vector<8x1xf32>
    %117 = vector.broadcast %114 : vector<8x1xf32> to vector<8x8xf32>
    %118 = arith.subf %111, %117 : vector<8x8xf32>
    %119 = math.exp %118 : vector<8x8xf32>
    %120 = arith.mulf %116, %96 : vector<8x1xf32>
    %cst_40 = arith.constant dense<0.000000e+00> : vector<8xf32>
    %121 = vector.multi_reduction <add>, %119, %cst_40 [1] : vector<8x8xf32> to vector<8xf32>
    %122 = vector.shape_cast %121 : vector<8xf32> to vector<8x1xf32>
    %123 = arith.addf %120, %122 : vector<8x1xf32>
    %124 = vector.broadcast %116 : vector<8x1xf32> to vector<8x8xf32>
    %125 = arith.mulf %124, %100 : vector<8x8xf32>
    %cst_41 = arith.constant dense<0.000000e+00> : vector<8x8xf32>
    %126 = tpu.matmul %119, %102, %cst_41 {dimension_numbers = #tpu.dot_dimension_numbers<[1], [0], [0], [1], [0, 0, 1, 1], [], []>} : vector<8x8xf32>, vector<8x8xf32>, vector<8x8xf32> -> vector<8x8xf32>
    %127 = arith.addf %125, %126 : vector<8x8xf32>
    %128 = tpu.reciprocal %123 {approx = true} : vector<8x1xf32> -> vector<8x1xf32>
    %129 = vector.broadcast %128 : vector<8x1xf32> to vector<8x8xf32>
    %130 = arith.mulf %127, %129 : vector<8x8xf32>
    %131 = tpu.concatenate %76, %130 in 0 : vector<8x8xf32>, vector<8x8xf32> -> vector<16x8xf32>
    %132 = vector.extract_strided_slice %31 {offsets = [0, 8], sizes = [16, 8], strides = [1, 1]} : vector<16x32xf32> to vector<16x8xf32>
    %133 = vector.extract_strided_slice %32 {offsets = [0, 8], sizes = [16, 8], strides = [1, 1]} : vector<16x32xf32> to vector<16x8xf32>
    %134 = vector.extract_strided_slice %33 {offsets = [0, 8], sizes = [16, 8], strides = [1, 1]} : vector<16x32xf32> to vector<16x8xf32>
    %135 = vector.extract_strided_slice %132 {offsets = [0, 0], sizes = [8, 8], strides = [1, 1]} : vector<16x8xf32> to vector<8x8xf32>
    %cst_42 = arith.constant -1.000000e+30 : f32
    %136 = vector.broadcast %cst_42 : f32 to vector<8x1xf32>
    %cst_43 = arith.constant 0.000000e+00 : f32
    %137 = vector.broadcast %cst_43 : f32 to vector<8x1xf32>
    %cst_44 = arith.constant 0.000000e+00 : f32
    %138 = vector.broadcast %cst_44 : f32 to vector<8x8xf32>
    %139 = vector.extract_strided_slice %133 {offsets = [0, 0], sizes = [8, 8], strides = [1, 1]} : vector<16x8xf32> to vector<8x8xf32>
    %140 = vector.extract_strided_slice %134 {offsets = [0, 0], sizes = [8, 8], strides = [1, 1]} : vector<16x8xf32> to vector<8x8xf32>
    %141 = tpu.transpose %139, [1, 0] : vector<8x8xf32> -> vector<8x8xf32>
    %cst_45 = arith.constant dense<0.000000e+00> : vector<8x8xf32>
    %142 = tpu.matmul %135, %141, %cst_45 {dimension_numbers = #tpu.dot_dimension_numbers<[1], [0], [0], [1], [0, 0, 1, 1], [], []>} : vector<8x8xf32>, vector<8x8xf32>, vector<8x8xf32> -> vector<8x8xf32>
    %143 = tpu.iota {dimensions = array<i32: 0>} : vector<8x1xi32>
    %144 = tpu.iota {dimensions = array<i32: 1>} : vector<1x8xi32>
    %145 = vector.broadcast %144 : vector<1x8xi32> to vector<8x8xi32>
    %146 = vector.broadcast %143 : vector<8x1xi32> to vector<8x8xi32>
    %147 = arith.cmpi sle, %145, %146 : vector<8x8xi32>
    %cst_46 = arith.constant -1.000000e+04 : f32
    %148 = vector.broadcast %cst_46 : f32 to vector<8x8xf32>
    %149 = arith.select %147, %142, %148 : vector<8x8xi1>, vector<8x8xf32>
    %cst_47 = arith.constant dense<0xFF800000> : vector<8xf32>
    %150 = vector.multi_reduction <maximumf>, %149, %cst_47 [1] : vector<8x8xf32> to vector<8xf32>
    %151 = vector.shape_cast %150 : vector<8xf32> to vector<8x1xf32>
    %152 = arith.maximumf %136, %151 : vector<8x1xf32>
    %153 = arith.subf %136, %152 : vector<8x1xf32>
    %154 = math.exp %153 : vector<8x1xf32>
    %155 = vector.broadcast %152 : vector<8x1xf32> to vector<8x8xf32>
    %156 = arith.subf %149, %155 : vector<8x8xf32>
    %157 = math.exp %156 : vector<8x8xf32>
    %158 = arith.mulf %154, %137 : vector<8x1xf32>
    %cst_48 = arith.constant dense<0.000000e+00> : vector<8xf32>
    %159 = vector.multi_reduction <add>, %157, %cst_48 [1] : vector<8x8xf32> to vector<8xf32>
    %160 = vector.shape_cast %159 : vector<8xf32> to vector<8x1xf32>
    %161 = arith.addf %158, %160 : vector<8x1xf32>
    %162 = vector.broadcast %154 : vector<8x1xf32> to vector<8x8xf32>
    %163 = arith.mulf %162, %138 : vector<8x8xf32>
    %cst_49 = arith.constant dense<0.000000e+00> : vector<8x8xf32>
    %164 = tpu.matmul %157, %140, %cst_49 {dimension_numbers = #tpu.dot_dimension_numbers<[1], [0], [0], [1], [0, 0, 1, 1], [], []>} : vector<8x8xf32>, vector<8x8xf32>, vector<8x8xf32> -> vector<8x8xf32>
    %165 = arith.addf %163, %164 : vector<8x8xf32>
    %166 = tpu.reciprocal %161 {approx = true} : vector<8x1xf32> -> vector<8x1xf32>
    %167 = vector.broadcast %166 : vector<8x1xf32> to vector<8x8xf32>
    %168 = arith.mulf %165, %167 : vector<8x8xf32>
    %169 = vector.extract_strided_slice %132 {offsets = [8, 0], sizes = [8, 8], strides = [1, 1]} : vector<16x8xf32> to vector<8x8xf32>
    %cst_50 = arith.constant -1.000000e+30 : f32
    %170 = vector.broadcast %cst_50 : f32 to vector<8x1xf32>
    %cst_51 = arith.constant 0.000000e+00 : f32
    %171 = vector.broadcast %cst_51 : f32 to vector<8x1xf32>
    %cst_52 = arith.constant 0.000000e+00 : f32
    %172 = vector.broadcast %cst_52 : f32 to vector<8x8xf32>
    %173 = vector.extract_strided_slice %133 {offsets = [0, 0], sizes = [8, 8], strides = [1, 1]} : vector<16x8xf32> to vector<8x8xf32>
    %174 = vector.extract_strided_slice %134 {offsets = [0, 0], sizes = [8, 8], strides = [1, 1]} : vector<16x8xf32> to vector<8x8xf32>
    %175 = tpu.transpose %173, [1, 0] : vector<8x8xf32> -> vector<8x8xf32>
    %cst_53 = arith.constant dense<0.000000e+00> : vector<8x8xf32>
    %176 = tpu.matmul %169, %175, %cst_53 {dimension_numbers = #tpu.dot_dimension_numbers<[1], [0], [0], [1], [0, 0, 1, 1], [], []>} : vector<8x8xf32>, vector<8x8xf32>, vector<8x8xf32> -> vector<8x8xf32>
    %cst_54 = arith.constant dense<0xFF800000> : vector<8xf32>
    %177 = vector.multi_reduction <maximumf>, %176, %cst_54 [1] : vector<8x8xf32> to vector<8xf32>
    %178 = vector.shape_cast %177 : vector<8xf32> to vector<8x1xf32>
    %179 = arith.maximumf %170, %178 : vector<8x1xf32>
    %180 = arith.subf %170, %179 : vector<8x1xf32>
    %181 = math.exp %180 : vector<8x1xf32>
    %182 = vector.broadcast %179 : vector<8x1xf32> to vector<8x8xf32>
    %183 = arith.subf %176, %182 : vector<8x8xf32>
    %184 = math.exp %183 : vector<8x8xf32>
    %185 = arith.mulf %181, %171 : vector<8x1xf32>
    %cst_55 = arith.constant dense<0.000000e+00> : vector<8xf32>
    %186 = vector.multi_reduction <add>, %184, %cst_55 [1] : vector<8x8xf32> to vector<8xf32>
    %187 = vector.shape_cast %186 : vector<8xf32> to vector<8x1xf32>
    %188 = arith.addf %185, %187 : vector<8x1xf32>
    %189 = vector.broadcast %181 : vector<8x1xf32> to vector<8x8xf32>
    %190 = arith.mulf %189, %172 : vector<8x8xf32>
    %cst_56 = arith.constant dense<0.000000e+00> : vector<8x8xf32>
    %191 = tpu.matmul %184, %174, %cst_56 {dimension_numbers = #tpu.dot_dimension_numbers<[1], [0], [0], [1], [0, 0, 1, 1], [], []>} : vector<8x8xf32>, vector<8x8xf32>, vector<8x8xf32> -> vector<8x8xf32>
    %192 = arith.addf %190, %191 : vector<8x8xf32>
    %193 = vector.extract_strided_slice %133 {offsets = [8, 0], sizes = [8, 8], strides = [1, 1]} : vector<16x8xf32> to vector<8x8xf32>
    %194 = vector.extract_strided_slice %134 {offsets = [8, 0], sizes = [8, 8], strides = [1, 1]} : vector<16x8xf32> to vector<8x8xf32>
    %195 = tpu.transpose %193, [1, 0] : vector<8x8xf32> -> vector<8x8xf32>
    %cst_57 = arith.constant dense<0.000000e+00> : vector<8x8xf32>
    %196 = tpu.matmul %169, %195, %cst_57 {dimension_numbers = #tpu.dot_dimension_numbers<[1], [0], [0], [1], [0, 0, 1, 1], [], []>} : vector<8x8xf32>, vector<8x8xf32>, vector<8x8xf32> -> vector<8x8xf32>
    %197 = tpu.iota {dimensions = array<i32: 0>} : vector<8x1xi32>
    %198 = tpu.iota {dimensions = array<i32: 1>} : vector<1x8xi32>
    %199 = vector.broadcast %198 : vector<1x8xi32> to vector<8x8xi32>
    %200 = vector.broadcast %197 : vector<8x1xi32> to vector<8x8xi32>
    %201 = arith.cmpi sle, %199, %200 : vector<8x8xi32>
    %cst_58 = arith.constant -1.000000e+04 : f32
    %202 = vector.broadcast %cst_58 : f32 to vector<8x8xf32>
    %203 = arith.select %201, %196, %202 : vector<8x8xi1>, vector<8x8xf32>
    %cst_59 = arith.constant dense<0xFF800000> : vector<8xf32>
    %204 = vector.multi_reduction <maximumf>, %203, %cst_59 [1] : vector<8x8xf32> to vector<8xf32>
    %205 = vector.shape_cast %204 : vector<8xf32> to vector<8x1xf32>
    %206 = arith.maximumf %179, %205 : vector<8x1xf32>
    %207 = arith.subf %179, %206 : vector<8x1xf32>
    %208 = math.exp %207 : vector<8x1xf32>
    %209 = vector.broadcast %206 : vector<8x1xf32> to vector<8x8xf32>
    %210 = arith.subf %203, %209 : vector<8x8xf32>
    %211 = math.exp %210 : vector<8x8xf32>
    %212 = arith.mulf %208, %188 : vector<8x1xf32>
    %cst_60 = arith.constant dense<0.000000e+00> : vector<8xf32>
    %213 = vector.multi_reduction <add>, %211, %cst_60 [1] : vector<8x8xf32> to vector<8xf32>
    %214 = vector.shape_cast %213 : vector<8xf32> to vector<8x1xf32>
    %215 = arith.addf %212, %214 : vector<8x1xf32>
    %216 = vector.broadcast %208 : vector<8x1xf32> to vector<8x8xf32>
    %217 = arith.mulf %216, %192 : vector<8x8xf32>
    %cst_61 = arith.constant dense<0.000000e+00> : vector<8x8xf32>
    %218 = tpu.matmul %211, %194, %cst_61 {dimension_numbers = #tpu.dot_dimension_numbers<[1], [0], [0], [1], [0, 0, 1, 1], [], []>} : vector<8x8xf32>, vector<8x8xf32>, vector<8x8xf32> -> vector<8x8xf32>
    %219 = arith.addf %217, %218 : vector<8x8xf32>
    %220 = tpu.reciprocal %215 {approx = true} : vector<8x1xf32> -> vector<8x1xf32>
    %221 = vector.broadcast %220 : vector<8x1xf32> to vector<8x8xf32>
    %222 = arith.mulf %219, %221 : vector<8x8xf32>
    %223 = tpu.concatenate %168, %222 in 0 : vector<8x8xf32>, vector<8x8xf32> -> vector<16x8xf32>
    %224 = vector.extract_strided_slice %31 {offsets = [0, 16], sizes = [16, 8], strides = [1, 1]} : vector<16x32xf32> to vector<16x8xf32>
    %225 = vector.extract_strided_slice %32 {offsets = [0, 16], sizes = [16, 8], strides = [1, 1]} : vector<16x32xf32> to vector<16x8xf32>
    %226 = vector.extract_strided_slice %33 {offsets = [0, 16], sizes = [16, 8], strides = [1, 1]} : vector<16x32xf32> to vector<16x8xf32>
    %227 = vector.extract_strided_slice %224 {offsets = [0, 0], sizes = [8, 8], strides = [1, 1]} : vector<16x8xf32> to vector<8x8xf32>
    %cst_62 = arith.constant -1.000000e+30 : f32
    %228 = vector.broadcast %cst_62 : f32 to vector<8x1xf32>
    %cst_63 = arith.constant 0.000000e+00 : f32
    %229 = vector.broadcast %cst_63 : f32 to vector<8x1xf32>
    %cst_64 = arith.constant 0.000000e+00 : f32
    %230 = vector.broadcast %cst_64 : f32 to vector<8x8xf32>
    %231 = vector.extract_strided_slice %225 {offsets = [0, 0], sizes = [8, 8], strides = [1, 1]} : vector<16x8xf32> to vector<8x8xf32>
    %232 = vector.extract_strided_slice %226 {offsets = [0, 0], sizes = [8, 8], strides = [1, 1]} : vector<16x8xf32> to vector<8x8xf32>
    %233 = tpu.transpose %231, [1, 0] : vector<8x8xf32> -> vector<8x8xf32>
    %cst_65 = arith.constant dense<0.000000e+00> : vector<8x8xf32>
    %234 = tpu.matmul %227, %233, %cst_65 {dimension_numbers = #tpu.dot_dimension_numbers<[1], [0], [0], [1], [0, 0, 1, 1], [], []>} : vector<8x8xf32>, vector<8x8xf32>, vector<8x8xf32> -> vector<8x8xf32>
    %235 = tpu.iota {dimensions = array<i32: 0>} : vector<8x1xi32>
    %236 = tpu.iota {dimensions = array<i32: 1>} : vector<1x8xi32>
    %237 = vector.broadcast %236 : vector<1x8xi32> to vector<8x8xi32>
    %238 = vector.broadcast %235 : vector<8x1xi32> to vector<8x8xi32>
    %239 = arith.cmpi sle, %237, %238 : vector<8x8xi32>
    %cst_66 = arith.constant -1.000000e+04 : f32
    %240 = vector.broadcast %cst_66 : f32 to vector<8x8xf32>
    %241 = arith.select %239, %234, %240 : vector<8x8xi1>, vector<8x8xf32>
    %cst_67 = arith.constant dense<0xFF800000> : vector<8xf32>
    %242 = vector.multi_reduction <maximumf>, %241, %cst_67 [1] : vector<8x8xf32> to vector<8xf32>
    %243 = vector.shape_cast %242 : vector<8xf32> to vector<8x1xf32>
    %244 = arith.maximumf %228, %243 : vector<8x1xf32>
    %245 = arith.subf %228, %244 : vector<8x1xf32>
    %246 = math.exp %245 : vector<8x1xf32>
    %247 = vector.broadcast %244 : vector<8x1xf32> to vector<8x8xf32>
    %248 = arith.subf %241, %247 : vector<8x8xf32>
    %249 = math.exp %248 : vector<8x8xf32>
    %250 = arith.mulf %246, %229 : vector<8x1xf32>
    %cst_68 = arith.constant dense<0.000000e+00> : vector<8xf32>
    %251 = vector.multi_reduction <add>, %249, %cst_68 [1] : vector<8x8xf32> to vector<8xf32>
    %252 = vector.shape_cast %251 : vector<8xf32> to vector<8x1xf32>
    %253 = arith.addf %250, %252 : vector<8x1xf32>
    %254 = vector.broadcast %246 : vector<8x1xf32> to vector<8x8xf32>
    %255 = arith.mulf %254, %230 : vector<8x8xf32>
    %cst_69 = arith.constant dense<0.000000e+00> : vector<8x8xf32>
    %256 = tpu.matmul %249, %232, %cst_69 {dimension_numbers = #tpu.dot_dimension_numbers<[1], [0], [0], [1], [0, 0, 1, 1], [], []>} : vector<8x8xf32>, vector<8x8xf32>, vector<8x8xf32> -> vector<8x8xf32>
    %257 = arith.addf %255, %256 : vector<8x8xf32>
    %258 = tpu.reciprocal %253 {approx = true} : vector<8x1xf32> -> vector<8x1xf32>
    %259 = vector.broadcast %258 : vector<8x1xf32> to vector<8x8xf32>
    %260 = arith.mulf %257, %259 : vector<8x8xf32>
    %261 = vector.extract_strided_slice %224 {offsets = [8, 0], sizes = [8, 8], strides = [1, 1]} : vector<16x8xf32> to vector<8x8xf32>
    %cst_70 = arith.constant -1.000000e+30 : f32
    %262 = vector.broadcast %cst_70 : f32 to vector<8x1xf32>
    %cst_71 = arith.constant 0.000000e+00 : f32
    %263 = vector.broadcast %cst_71 : f32 to vector<8x1xf32>
    %cst_72 = arith.constant 0.000000e+00 : f32
    %264 = vector.broadcast %cst_72 : f32 to vector<8x8xf32>
    %265 = vector.extract_strided_slice %225 {offsets = [0, 0], sizes = [8, 8], strides = [1, 1]} : vector<16x8xf32> to vector<8x8xf32>
    %266 = vector.extract_strided_slice %226 {offsets = [0, 0], sizes = [8, 8], strides = [1, 1]} : vector<16x8xf32> to vector<8x8xf32>
    %267 = tpu.transpose %265, [1, 0] : vector<8x8xf32> -> vector<8x8xf32>
    %cst_73 = arith.constant dense<0.000000e+00> : vector<8x8xf32>
    %268 = tpu.matmul %261, %267, %cst_73 {dimension_numbers = #tpu.dot_dimension_numbers<[1], [0], [0], [1], [0, 0, 1, 1], [], []>} : vector<8x8xf32>, vector<8x8xf32>, vector<8x8xf32> -> vector<8x8xf32>
    %cst_74 = arith.constant dense<0xFF800000> : vector<8xf32>
    %269 = vector.multi_reduction <maximumf>, %268, %cst_74 [1] : vector<8x8xf32> to vector<8xf32>
    %270 = vector.shape_cast %269 : vector<8xf32> to vector<8x1xf32>
    %271 = arith.maximumf %262, %270 : vector<8x1xf32>
    %272 = arith.subf %262, %271 : vector<8x1xf32>
    %273 = math.exp %272 : vector<8x1xf32>
    %274 = vector.broadcast %271 : vector<8x1xf32> to vector<8x8xf32>
    %275 = arith.subf %268, %274 : vector<8x8xf32>
    %276 = math.exp %275 : vector<8x8xf32>
    %277 = arith.mulf %273, %263 : vector<8x1xf32>
    %cst_75 = arith.constant dense<0.000000e+00> : vector<8xf32>
    %278 = vector.multi_reduction <add>, %276, %cst_75 [1] : vector<8x8xf32> to vector<8xf32>
    %279 = vector.shape_cast %278 : vector<8xf32> to vector<8x1xf32>
    %280 = arith.addf %277, %279 : vector<8x1xf32>
    %281 = vector.broadcast %273 : vector<8x1xf32> to vector<8x8xf32>
    %282 = arith.mulf %281, %264 : vector<8x8xf32>
    %cst_76 = arith.constant dense<0.000000e+00> : vector<8x8xf32>
    %283 = tpu.matmul %276, %266, %cst_76 {dimension_numbers = #tpu.dot_dimension_numbers<[1], [0], [0], [1], [0, 0, 1, 1], [], []>} : vector<8x8xf32>, vector<8x8xf32>, vector<8x8xf32> -> vector<8x8xf32>
    %284 = arith.addf %282, %283 : vector<8x8xf32>
    %285 = vector.extract_strided_slice %225 {offsets = [8, 0], sizes = [8, 8], strides = [1, 1]} : vector<16x8xf32> to vector<8x8xf32>
    %286 = vector.extract_strided_slice %226 {offsets = [8, 0], sizes = [8, 8], strides = [1, 1]} : vector<16x8xf32> to vector<8x8xf32>
    %287 = tpu.transpose %285, [1, 0] : vector<8x8xf32> -> vector<8x8xf32>
    %cst_77 = arith.constant dense<0.000000e+00> : vector<8x8xf32>
    %288 = tpu.matmul %261, %287, %cst_77 {dimension_numbers = #tpu.dot_dimension_numbers<[1], [0], [0], [1], [0, 0, 1, 1], [], []>} : vector<8x8xf32>, vector<8x8xf32>, vector<8x8xf32> -> vector<8x8xf32>
    %289 = tpu.iota {dimensions = array<i32: 0>} : vector<8x1xi32>
    %290 = tpu.iota {dimensions = array<i32: 1>} : vector<1x8xi32>
    %291 = vector.broadcast %290 : vector<1x8xi32> to vector<8x8xi32>
    %292 = vector.broadcast %289 : vector<8x1xi32> to vector<8x8xi32>
    %293 = arith.cmpi sle, %291, %292 : vector<8x8xi32>
    %cst_78 = arith.constant -1.000000e+04 : f32
    %294 = vector.broadcast %cst_78 : f32 to vector<8x8xf32>
    %295 = arith.select %293, %288, %294 : vector<8x8xi1>, vector<8x8xf32>
    %cst_79 = arith.constant dense<0xFF800000> : vector<8xf32>
    %296 = vector.multi_reduction <maximumf>, %295, %cst_79 [1] : vector<8x8xf32> to vector<8xf32>
    %297 = vector.shape_cast %296 : vector<8xf32> to vector<8x1xf32>
    %298 = arith.maximumf %271, %297 : vector<8x1xf32>
    %299 = arith.subf %271, %298 : vector<8x1xf32>
    %300 = math.exp %299 : vector<8x1xf32>
    %301 = vector.broadcast %298 : vector<8x1xf32> to vector<8x8xf32>
    %302 = arith.subf %295, %301 : vector<8x8xf32>
    %303 = math.exp %302 : vector<8x8xf32>
    %304 = arith.mulf %300, %280 : vector<8x1xf32>
    %cst_80 = arith.constant dense<0.000000e+00> : vector<8xf32>
    %305 = vector.multi_reduction <add>, %303, %cst_80 [1] : vector<8x8xf32> to vector<8xf32>
    %306 = vector.shape_cast %305 : vector<8xf32> to vector<8x1xf32>
    %307 = arith.addf %304, %306 : vector<8x1xf32>
    %308 = vector.broadcast %300 : vector<8x1xf32> to vector<8x8xf32>
    %309 = arith.mulf %308, %284 : vector<8x8xf32>
    %cst_81 = arith.constant dense<0.000000e+00> : vector<8x8xf32>
    %310 = tpu.matmul %303, %286, %cst_81 {dimension_numbers = #tpu.dot_dimension_numbers<[1], [0], [0], [1], [0, 0, 1, 1], [], []>} : vector<8x8xf32>, vector<8x8xf32>, vector<8x8xf32> -> vector<8x8xf32>
    %311 = arith.addf %309, %310 : vector<8x8xf32>
    %312 = tpu.reciprocal %307 {approx = true} : vector<8x1xf32> -> vector<8x1xf32>
    %313 = vector.broadcast %312 : vector<8x1xf32> to vector<8x8xf32>
    %314 = arith.mulf %311, %313 : vector<8x8xf32>
    %315 = tpu.concatenate %260, %314 in 0 : vector<8x8xf32>, vector<8x8xf32> -> vector<16x8xf32>
    %316 = vector.extract_strided_slice %31 {offsets = [0, 24], sizes = [16, 8], strides = [1, 1]} : vector<16x32xf32> to vector<16x8xf32>
    %317 = vector.extract_strided_slice %32 {offsets = [0, 24], sizes = [16, 8], strides = [1, 1]} : vector<16x32xf32> to vector<16x8xf32>
    %318 = vector.extract_strided_slice %33 {offsets = [0, 24], sizes = [16, 8], strides = [1, 1]} : vector<16x32xf32> to vector<16x8xf32>
    %319 = vector.extract_strided_slice %316 {offsets = [0, 0], sizes = [8, 8], strides = [1, 1]} : vector<16x8xf32> to vector<8x8xf32>
    %cst_82 = arith.constant -1.000000e+30 : f32
    %320 = vector.broadcast %cst_82 : f32 to vector<8x1xf32>
    %cst_83 = arith.constant 0.000000e+00 : f32
    %321 = vector.broadcast %cst_83 : f32 to vector<8x1xf32>
    %cst_84 = arith.constant 0.000000e+00 : f32
    %322 = vector.broadcast %cst_84 : f32 to vector<8x8xf32>
    %323 = vector.extract_strided_slice %317 {offsets = [0, 0], sizes = [8, 8], strides = [1, 1]} : vector<16x8xf32> to vector<8x8xf32>
    %324 = vector.extract_strided_slice %318 {offsets = [0, 0], sizes = [8, 8], strides = [1, 1]} : vector<16x8xf32> to vector<8x8xf32>
    %325 = tpu.transpose %323, [1, 0] : vector<8x8xf32> -> vector<8x8xf32>
    %cst_85 = arith.constant dense<0.000000e+00> : vector<8x8xf32>
    %326 = tpu.matmul %319, %325, %cst_85 {dimension_numbers = #tpu.dot_dimension_numbers<[1], [0], [0], [1], [0, 0, 1, 1], [], []>} : vector<8x8xf32>, vector<8x8xf32>, vector<8x8xf32> -> vector<8x8xf32>
    %327 = tpu.iota {dimensions = array<i32: 0>} : vector<8x1xi32>
    %328 = tpu.iota {dimensions = array<i32: 1>} : vector<1x8xi32>
    %329 = vector.broadcast %328 : vector<1x8xi32> to vector<8x8xi32>
    %330 = vector.broadcast %327 : vector<8x1xi32> to vector<8x8xi32>
    %331 = arith.cmpi sle, %329, %330 : vector<8x8xi32>
    %cst_86 = arith.constant -1.000000e+04 : f32
    %332 = vector.broadcast %cst_86 : f32 to vector<8x8xf32>
    %333 = arith.select %331, %326, %332 : vector<8x8xi1>, vector<8x8xf32>
    %cst_87 = arith.constant dense<0xFF800000> : vector<8xf32>
    %334 = vector.multi_reduction <maximumf>, %333, %cst_87 [1] : vector<8x8xf32> to vector<8xf32>
    %335 = vector.shape_cast %334 : vector<8xf32> to vector<8x1xf32>
    %336 = arith.maximumf %320, %335 : vector<8x1xf32>
    %337 = arith.subf %320, %336 : vector<8x1xf32>
    %338 = math.exp %337 : vector<8x1xf32>
    %339 = vector.broadcast %336 : vector<8x1xf32> to vector<8x8xf32>
    %340 = arith.subf %333, %339 : vector<8x8xf32>
    %341 = math.exp %340 : vector<8x8xf32>
    %342 = arith.mulf %338, %321 : vector<8x1xf32>
    %cst_88 = arith.constant dense<0.000000e+00> : vector<8xf32>
    %343 = vector.multi_reduction <add>, %341, %cst_88 [1] : vector<8x8xf32> to vector<8xf32>
    %344 = vector.shape_cast %343 : vector<8xf32> to vector<8x1xf32>
    %345 = arith.addf %342, %344 : vector<8x1xf32>
    %346 = vector.broadcast %338 : vector<8x1xf32> to vector<8x8xf32>
    %347 = arith.mulf %346, %322 : vector<8x8xf32>
    %cst_89 = arith.constant dense<0.000000e+00> : vector<8x8xf32>
    %348 = tpu.matmul %341, %324, %cst_89 {dimension_numbers = #tpu.dot_dimension_numbers<[1], [0], [0], [1], [0, 0, 1, 1], [], []>} : vector<8x8xf32>, vector<8x8xf32>, vector<8x8xf32> -> vector<8x8xf32>
    %349 = arith.addf %347, %348 : vector<8x8xf32>
    %350 = tpu.reciprocal %345 {approx = true} : vector<8x1xf32> -> vector<8x1xf32>
    %351 = vector.broadcast %350 : vector<8x1xf32> to vector<8x8xf32>
    %352 = arith.mulf %349, %351 : vector<8x8xf32>
    %353 = vector.extract_strided_slice %316 {offsets = [8, 0], sizes = [8, 8], strides = [1, 1]} : vector<16x8xf32> to vector<8x8xf32>
    %cst_90 = arith.constant -1.000000e+30 : f32
    %354 = vector.broadcast %cst_90 : f32 to vector<8x1xf32>
    %cst_91 = arith.constant 0.000000e+00 : f32
    %355 = vector.broadcast %cst_91 : f32 to vector<8x1xf32>
    %cst_92 = arith.constant 0.000000e+00 : f32
    %356 = vector.broadcast %cst_92 : f32 to vector<8x8xf32>
    %357 = vector.extract_strided_slice %317 {offsets = [0, 0], sizes = [8, 8], strides = [1, 1]} : vector<16x8xf32> to vector<8x8xf32>
    %358 = vector.extract_strided_slice %318 {offsets = [0, 0], sizes = [8, 8], strides = [1, 1]} : vector<16x8xf32> to vector<8x8xf32>
    %359 = tpu.transpose %357, [1, 0] : vector<8x8xf32> -> vector<8x8xf32>
    %cst_93 = arith.constant dense<0.000000e+00> : vector<8x8xf32>
    %360 = tpu.matmul %353, %359, %cst_93 {dimension_numbers = #tpu.dot_dimension_numbers<[1], [0], [0], [1], [0, 0, 1, 1], [], []>} : vector<8x8xf32>, vector<8x8xf32>, vector<8x8xf32> -> vector<8x8xf32>
    %cst_94 = arith.constant dense<0xFF800000> : vector<8xf32>
    %361 = vector.multi_reduction <maximumf>, %360, %cst_94 [1] : vector<8x8xf32> to vector<8xf32>
    %362 = vector.shape_cast %361 : vector<8xf32> to vector<8x1xf32>
    %363 = arith.maximumf %354, %362 : vector<8x1xf32>
    %364 = arith.subf %354, %363 : vector<8x1xf32>
    %365 = math.exp %364 : vector<8x1xf32>
    %366 = vector.broadcast %363 : vector<8x1xf32> to vector<8x8xf32>
    %367 = arith.subf %360, %366 : vector<8x8xf32>
    %368 = math.exp %367 : vector<8x8xf32>
    %369 = arith.mulf %365, %355 : vector<8x1xf32>
    %cst_95 = arith.constant dense<0.000000e+00> : vector<8xf32>
    %370 = vector.multi_reduction <add>, %368, %cst_95 [1] : vector<8x8xf32> to vector<8xf32>
    %371 = vector.shape_cast %370 : vector<8xf32> to vector<8x1xf32>
    %372 = arith.addf %369, %371 : vector<8x1xf32>
    %373 = vector.broadcast %365 : vector<8x1xf32> to vector<8x8xf32>
    %374 = arith.mulf %373, %356 : vector<8x8xf32>
    %cst_96 = arith.constant dense<0.000000e+00> : vector<8x8xf32>
    %375 = tpu.matmul %368, %358, %cst_96 {dimension_numbers = #tpu.dot_dimension_numbers<[1], [0], [0], [1], [0, 0, 1, 1], [], []>} : vector<8x8xf32>, vector<8x8xf32>, vector<8x8xf32> -> vector<8x8xf32>
    %376 = arith.addf %374, %375 : vector<8x8xf32>
    %377 = vector.extract_strided_slice %317 {offsets = [8, 0], sizes = [8, 8], strides = [1, 1]} : vector<16x8xf32> to vector<8x8xf32>
    %378 = vector.extract_strided_slice %318 {offsets = [8, 0], sizes = [8, 8], strides = [1, 1]} : vector<16x8xf32> to vector<8x8xf32>
    %379 = tpu.transpose %377, [1, 0] : vector<8x8xf32> -> vector<8x8xf32>
    %cst_97 = arith.constant dense<0.000000e+00> : vector<8x8xf32>
    %380 = tpu.matmul %353, %379, %cst_97 {dimension_numbers = #tpu.dot_dimension_numbers<[1], [0], [0], [1], [0, 0, 1, 1], [], []>} : vector<8x8xf32>, vector<8x8xf32>, vector<8x8xf32> -> vector<8x8xf32>
    %381 = tpu.iota {dimensions = array<i32: 0>} : vector<8x1xi32>
    %382 = tpu.iota {dimensions = array<i32: 1>} : vector<1x8xi32>
    %383 = vector.broadcast %382 : vector<1x8xi32> to vector<8x8xi32>
    %384 = vector.broadcast %381 : vector<8x1xi32> to vector<8x8xi32>
    %385 = arith.cmpi sle, %383, %384 : vector<8x8xi32>
    %cst_98 = arith.constant -1.000000e+04 : f32
    %386 = vector.broadcast %cst_98 : f32 to vector<8x8xf32>
    %387 = arith.select %385, %380, %386 : vector<8x8xi1>, vector<8x8xf32>
    %cst_99 = arith.constant dense<0xFF800000> : vector<8xf32>
    %388 = vector.multi_reduction <maximumf>, %387, %cst_99 [1] : vector<8x8xf32> to vector<8xf32>
    %389 = vector.shape_cast %388 : vector<8xf32> to vector<8x1xf32>
    %390 = arith.maximumf %363, %389 : vector<8x1xf32>
    %391 = arith.subf %363, %390 : vector<8x1xf32>
    %392 = math.exp %391 : vector<8x1xf32>
    %393 = vector.broadcast %390 : vector<8x1xf32> to vector<8x8xf32>
    %394 = arith.subf %387, %393 : vector<8x8xf32>
    %395 = math.exp %394 : vector<8x8xf32>
    %396 = arith.mulf %392, %372 : vector<8x1xf32>
    %cst_100 = arith.constant dense<0.000000e+00> : vector<8xf32>
    %397 = vector.multi_reduction <add>, %395, %cst_100 [1] : vector<8x8xf32> to vector<8xf32>
    %398 = vector.shape_cast %397 : vector<8xf32> to vector<8x1xf32>
    %399 = arith.addf %396, %398 : vector<8x1xf32>
    %400 = vector.broadcast %392 : vector<8x1xf32> to vector<8x8xf32>
    %401 = arith.mulf %400, %376 : vector<8x8xf32>
    %cst_101 = arith.constant dense<0.000000e+00> : vector<8x8xf32>
    %402 = tpu.matmul %395, %378, %cst_101 {dimension_numbers = #tpu.dot_dimension_numbers<[1], [0], [0], [1], [0, 0, 1, 1], [], []>} : vector<8x8xf32>, vector<8x8xf32>, vector<8x8xf32> -> vector<8x8xf32>
    %403 = arith.addf %401, %402 : vector<8x8xf32>
    %404 = tpu.reciprocal %399 {approx = true} : vector<8x1xf32> -> vector<8x1xf32>
    %405 = vector.broadcast %404 : vector<8x1xf32> to vector<8x8xf32>
    %406 = arith.mulf %403, %405 : vector<8x8xf32>
    %407 = tpu.concatenate %352, %406 in 0 : vector<8x8xf32>, vector<8x8xf32> -> vector<16x8xf32>
    %408 = tpu.concatenate %131, %223, %315, %407 in 1 : vector<16x8xf32>, vector<16x8xf32>, vector<16x8xf32>, vector<16x8xf32> -> vector<16x32xf32>
    %c0_102 = arith.constant 0 : index
    %c0_103 = arith.constant 0 : index
    %409 = vector.load %arg6[%c0_102, %c0_103] : memref<32x32xf32, #tpu.memory_space<vmem>>, vector<32x32xf32>
    %cst_104 = arith.constant dense<0.000000e+00> : vector<16x32xf32>
    %410 = tpu.matmul %408, %409, %cst_104 {dimension_numbers = #tpu.dot_dimension_numbers<[1], [0], [0], [1], [0, 0, 1, 1], [], []>} : vector<16x32xf32>, vector<32x32xf32>, vector<16x32xf32> -> vector<16x32xf32>
    %c0_105 = arith.constant 0 : index
    %c0_106 = arith.constant 0 : index
    %411 = vector.load %arg7[%c0_105, %c0_106] : memref<1x32xf32, #tpu.memory_space<vmem>>, vector<1x32xf32>
    %412 = vector.broadcast %411 : vector<1x32xf32> to vector<16x32xf32>
    %413 = arith.addf %410, %412 : vector<16x32xf32>
    %414 = arith.addf %25, %413 : vector<16x32xf32>
    %c0_107 = arith.constant 0 : index
    %c0_108 = arith.constant 0 : index
    %415 = vector.load %arg8[%c0_107, %c0_108] : memref<1x32xf32, #tpu.memory_space<vmem>>, vector<1x32xf32>
    %c0_109 = arith.constant 0 : index
    %c0_110 = arith.constant 0 : index
    %416 = vector.load %arg9[%c0_109, %c0_110] : memref<1x32xf32, #tpu.memory_space<vmem>>, vector<1x32xf32>
    %cst_111 = arith.constant dense<0.000000e+00> : vector<16xf32>
    %417 = vector.multi_reduction <add>, %414, %cst_111 [1] : vector<16x32xf32> to vector<16xf32>
    %418 = vector.shape_cast %417 : vector<16xf32> to vector<16x1xf32>
    %cst_112 = arith.constant 3.200000e+01 : f32
    %419 = vector.broadcast %cst_112 : f32 to vector<16x1xf32>
    %420 = arith.divf %418, %419 : vector<16x1xf32>
    %421 = vector.broadcast %420 : vector<16x1xf32> to vector<16x32xf32>
    %422 = arith.subf %414, %421 : vector<16x32xf32>
    %423 = arith.mulf %422, %422 : vector<16x32xf32>
    %cst_113 = arith.constant dense<0.000000e+00> : vector<16xf32>
    %424 = vector.multi_reduction <add>, %423, %cst_113 [1] : vector<16x32xf32> to vector<16xf32>
    %425 = vector.shape_cast %424 : vector<16xf32> to vector<16x1xf32>
    %cst_114 = arith.constant 3.200000e+01 : f32
    %426 = vector.broadcast %cst_114 : f32 to vector<16x1xf32>
    %427 = arith.divf %425, %426 : vector<16x1xf32>
    %428 = vector.broadcast %420 : vector<16x1xf32> to vector<16x32xf32>
    %429 = arith.subf %414, %428 : vector<16x32xf32>
    %cst_115 = arith.constant 9.99999974E-6 : f32
    %430 = vector.broadcast %cst_115 : f32 to vector<16x1xf32>
    %431 = arith.addf %427, %430 : vector<16x1xf32>
    %432 = math.rsqrt %431 : vector<16x1xf32>
    %433 = vector.broadcast %432 : vector<16x1xf32> to vector<16x32xf32>
    %434 = arith.mulf %429, %433 : vector<16x32xf32>
    %435 = vector.broadcast %415 : vector<1x32xf32> to vector<16x32xf32>
    %436 = arith.mulf %434, %435 : vector<16x32xf32>
    %437 = vector.broadcast %416 : vector<1x32xf32> to vector<16x32xf32>
    %438 = arith.addf %436, %437 : vector<16x32xf32>
    %c0_116 = arith.constant 0 : index
    %c0_117 = arith.constant 0 : index
    %439 = vector.load %arg10[%c0_116, %c0_117] : memref<32x128xf32, #tpu.memory_space<vmem>>, vector<32x128xf32>
    %cst_118 = arith.constant dense<0.000000e+00> : vector<16x128xf32>
    %440 = tpu.matmul %438, %439, %cst_118 {dimension_numbers = #tpu.dot_dimension_numbers<[1], [0], [0], [1], [0, 0, 1, 1], [], []>} : vector<16x32xf32>, vector<32x128xf32>, vector<16x128xf32> -> vector<16x128xf32>
    %c0_119 = arith.constant 0 : index
    %c0_120 = arith.constant 0 : index
    %441 = vector.load %arg11[%c0_119, %c0_120] : memref<1x128xf32, #tpu.memory_space<vmem>>, vector<1x128xf32>
    %442 = vector.broadcast %441 : vector<1x128xf32> to vector<16x128xf32>
    %443 = arith.addf %440, %442 : vector<16x128xf32>
    %cst_121 = arith.constant 5.000000e-01 : f32
    %444 = vector.broadcast %cst_121 : f32 to vector<16x128xf32>
    %445 = arith.mulf %444, %443 : vector<16x128xf32>
    %cst_122 = arith.constant 0.707106769 : f32
    %446 = vector.broadcast %cst_122 : f32 to vector<16x128xf32>
    %447 = arith.mulf %443, %446 : vector<16x128xf32>
    %448 = math.erf %447 : vector<16x128xf32>
    %cst_123 = arith.constant 1.000000e+00 : f32
    %449 = vector.broadcast %cst_123 : f32 to vector<16x128xf32>
    %450 = arith.addf %449, %448 : vector<16x128xf32>
    %451 = arith.mulf %445, %450 : vector<16x128xf32>
    %c0_124 = arith.constant 0 : index
    %c0_125 = arith.constant 0 : index
    %452 = vector.load %arg12[%c0_124, %c0_125] : memref<128x32xf32, #tpu.memory_space<vmem>>, vector<128x32xf32>
    %cst_126 = arith.constant dense<0.000000e+00> : vector<16x32xf32>
    %453 = tpu.matmul %451, %452, %cst_126 {dimension_numbers = #tpu.dot_dimension_numbers<[1], [0], [0], [1], [0, 0, 1, 1], [], []>} : vector<16x128xf32>, vector<128x32xf32>, vector<16x32xf32> -> vector<16x32xf32>
    %c0_127 = arith.constant 0 : index
    %c0_128 = arith.constant 0 : index
    %454 = vector.load %arg13[%c0_127, %c0_128] : memref<1x32xf32, #tpu.memory_space<vmem>>, vector<1x32xf32>
    %455 = vector.broadcast %454 : vector<1x32xf32> to vector<16x32xf32>
    %456 = arith.addf %453, %455 : vector<16x32xf32>
    %457 = arith.addf %438, %456 : vector<16x32xf32>
    %c0_129 = arith.constant 0 : index
    %c0_130 = arith.constant 0 : index
    %c0_131 = arith.constant 0 : index
    %458 = vector.load %arg14[%c0_129, %c0_130, %c0_131] : memref<1x16x32xf32, #tpu.memory_space<vmem>>, vector<1x16x32xf32>
    %459 = vector.shape_cast %458 : vector<1x16x32xf32> to vector<16x32xf32>
    %460 = vector.shape_cast %457 : vector<16x32xf32> to vector<1x16x32xf32>
    tpu.vector_store %arg14[%c0_129, %c0_130, %c0_131], %460 {strides = array<i32>} : memref<1x16x32xf32, #tpu.memory_space<vmem>>, vector<1x16x32xf32>,
    return
  }
  func.func @transform_0(%arg0: i32) -> (i32, i32, i32) {
    %c0_i32 = arith.constant 0 : i32
    %c0_i32_0 = arith.constant 0 : i32
    %c0_i32_1 = arith.constant 0 : i32
    return %arg0, %c0_i32, %c0_i32_0 : i32, i32, i32
  }
  func.func @transform_1(%arg0: i32) -> (i32, i32) {
    %c0_i32 = arith.constant 0 : i32
    %c0_i32_0 = arith.constant 0 : i32
    %c0_i32_1 = arith.constant 0 : i32
    return %c0_i32, %c0_i32_0 : i32, i32
  }
  func.func @transform_2(%arg0: i32) -> (i32, i32) {
    %c0_i32 = arith.constant 0 : i32
    %c0_i32_0 = arith.constant 0 : i32
    %c0_i32_1 = arith.constant 0 : i32
    return %c0_i32, %c0_i32_0 : i32, i32
  }
  func.func @transform_3(%arg0: i32) -> (i32, i32) {
    %c0_i32 = arith.constant 0 : i32
    %c0_i32_0 = arith.constant 0 : i32
    %c0_i32_1 = arith.constant 0 : i32
    return %c0_i32, %c0_i32_0 : i32, i32
  }
  func.func @transform_4(%arg0: i32) -> (i32, i32) {
    %c0_i32 = arith.constant 0 : i32
    %c0_i32_0 = arith.constant 0 : i32
    %c0_i32_1 = arith.constant 0 : i32
    return %c0_i32, %c0_i32_0 : i32, i32
  }
  func.func @transform_5(%arg0: i32) -> (i32, i32) {
    %c0_i32 = arith.constant 0 : i32
    %c0_i32_0 = arith.constant 0 : i32
    %c0_i32_1 = arith.constant 0 : i32
    return %c0_i32, %c0_i32_0 : i32, i32
  }
  func.func @transform_6(%arg0: i32) -> (i32, i32) {
    %c0_i32 = arith.constant 0 : i32
    %c0_i32_0 = arith.constant 0 : i32
    %c0_i32_1 = arith.constant 0 : i32
    return %c0_i32, %c0_i32_0 : i32, i32
  }
  func.func @transform_7(%arg0: i32) -> (i32, i32) {
    %c0_i32 = arith.constant 0 : i32
    %c0_i32_0 = arith.constant 0 : i32
    %c0_i32_1 = arith.constant 0 : i32
    return %c0_i32, %c0_i32_0 : i32, i32
  }
  func.func @transform_8(%arg0: i32) -> (i32, i32) {
    %c0_i32 = arith.constant 0 : i32
    %c0_i32_0 = arith.constant 0 : i32
    %c0_i32_1 = arith.constant 0 : i32
    return %c0_i32, %c0_i32_0 : i32, i32
  }
  func.func @transform_9(%arg0: i32) -> (i32, i32) {
    %c0_i32 = arith.constant 0 : i32
    %c0_i32_0 = arith.constant 0 : i32
    %c0_i32_1 = arith.constant 0 : i32
    return %c0_i32, %c0_i32_0 : i32, i32
  }
  func.func @transform_10(%arg0: i32) -> (i32, i32) {
    %c0_i32 = arith.constant 0 : i32
    %c0_i32_0 = arith.constant 0 : i32
    %c0_i32_1 = arith.constant 0 : i32
    return %c0_i32, %c0_i32_0 : i32, i32
  }
  func.func @transform_11(%arg0: i32) -> (i32, i32) {
    %c0_i32 = arith.constant 0 : i32
    %c0_i32_0 = arith.constant 0 : i32
    %c0_i32_1 = arith.constant 0 : i32
    return %c0_i32, %c0_i32_0 : i32, i32
  }
  func.func @transform_12(%arg0: i32) -> (i32, i32) {
    %c0_i32 = arith.constant 0 : i32
    %c0_i32_0 = arith.constant 0 : i32
    %c0_i32_1 = arith.constant 0 : i32
    return %c0_i32, %c0_i32_0 : i32, i32
  }
  func.func @transform_13(%arg0: i32) -> (i32, i32, i32) {
    %c0_i32 = arith.constant 0 : i32
    %c0_i32_0 = arith.constant 0 : i32
    %c0_i32_1 = arith.constant 0 : i32
    return %arg0, %c0_i32, %c0_i32_0 : i32, i32, i32
  }
  func.func @transform_14(%arg0: i32) -> (i32, i32, i32, i32) {
    %c0_i32 = arith.constant 0 : i32
    %c0_i32_0 = arith.constant 0 : i32
    %c0_i32_1 = arith.constant 0 : i32
    %c0_i32_2 = arith.constant 0 : i32
    return %c0_i32, %arg0, %c0_i32_0, %c0_i32_1 : i32, i32, i32, i32
  }
}

</mosaic_0001>

<bundles_post_ra>
// kernel: tpu_custom_call.1
= control target key start
LH: loop header
LB: loop body
LE: loop exit
PB: predicated region body
PF: predicated region fallthrough
CT: control target
= control target key end

     0   :  { %s4546_s0 = inlined_call_operand.vmem [shape: f32[2,16,32], index: 0, kind: input, shape index: {}]   ;;  %s4547_s1 = inlined_call_operand.vmem [shape: f32[1,32], index: 1, kind: input, shape index: {}]   ;;  %s4548_s2 = inlined_call_operand.vmem [shape: f32[1,32], index: 2, kind: input, shape index: {}]   ;;  %s4549_s3 = inlined_call_operand.vmem [shape: f32[32,96], index: 3, kind: input, shape index: {}]   ;;  %s4550_s4 = inlined_call_operand.vmem [shape: f32[1,96], index: 4, kind: input, shape index: {}]   ;;  %s4551_s5 = inlined_call_operand.vmem [shape: f32[32,32], index: 5, kind: input, shape index: {}]   ;;  %s4552_s6 = inlined_call_operand.vmem [shape: f32[1,32], index: 6, kind: input, shape index: {}]   ;;  %s4553_s7 = inlined_call_operand.vmem [shape: f32[1,32], index: 7, kind: input, shape index: {}]   ;;  %s4554_s8 = inlined_call_operand.vmem [shape: f32[1,32], index: 8, kind: input, shape index: {}]   ;;  %s4555_s9 = inlined_call_operand.vmem [shape: f32[32,128], index: 9, kind: input, shape index: {}]   ;;  %s4556_s10 = inlined_call_operand.vmem [shape: f32[1,128], index: 10, kind: input, shape index: {}]   ;;  %s4557_s11 = inlined_call_operand.vmem [shape: f32[128,32], index: 11, kind: input, shape index: {}]   ;;  %s4558_s12 = inlined_call_operand.vmem [shape: f32[1,32], index: 12, kind: input, shape index: {}]   ;;  %s4559_s13 = inlined_call_operand.hbm [shape: f32[2,16,32], index: 13, kind: output, shape index: {0}]   ;;  %s4560_s14 = inlined_call_operand.hbm [shape: f32[2,2,16,32], index: 14, kind: output, shape index: {1}]  }
   0x1   :  { %4564 = sst [smem:[#allocation10_spill]] %s4546_s0 }
   0x2   :  { %4565 = sst [smem:[#allocation11_spill]] %s4547_s1 }
   0x3   :  { %4566 = sst [smem:[#allocation12_spill]] %s4548_s2 }
   0x4   :  { %4567 = sst [smem:[#allocation13_spill]] %s4549_s3 }
   0x5   :  { %4568 = sst [smem:[#allocation14_spill]] %s4550_s4 }
   0x6   :  { %4569 = sst [smem:[#allocation15_spill]] %s4551_s5 }
   0x7   :  { %4570 = sst [smem:[#allocation16_spill]] %s4552_s6 }
   0x8   :  { %20 = vsyncpa [#allocation3], 0 }
   0x9   :  { %22 = vsyncpa [#allocation3 + $0x1], 0 }
   0xa   :  { %23 = vsyncpa [#allocation5], 0 }
   0xb   :  { %25 = vsyncpa [#allocation5 + $0x1], 0  ;;  %s3901_s29 = smov 0   ;;  %s3903_s30 = smov 0  }
   0xc   :  { %s3905_s15 = smov 0   ;;  %s3907_s16 = smov 0  }
   0xd LB: > { %s3922_s17 = sadd.s32 4294967295, %s3799_s16   ;;  %s3184_s18 = sadd.s32 4294967294, %s3799_s16   ;;  %s3799_s16 = sphi %s3907_s16, %s4589_s16   ;;  %s3795_s15 = sphi %s3905_s15, %s4588_s15   ;;  %s3791_s30 = sphi %s3903_s30, %s4587_s30   ;;  %s3787_s29 = sphi %s3901_s29, %s4586_s29  }
   0xe   : > { %s3926_s19 = sadd.s32 1, %s3799_s16   ;;  %s316_s20 = sadd.s32 1, %s3795_s15 }
   0xf   : > { %s313_s21 = ssub.s32 %s3799_s16, %s3926_s19  ;;  %p326_p0 = scmp.ne.s32.totalorder %s3795_s15, %s3791_s30 }
  0x10   : > { %p314_p1 = scmp.eq.s32.totalorder %s313_s21, 0  ;;  %p327_p2 = scmp.eq.s32.totalorder %s3922_s17, 1 }
  0x11   : > { %p332_p3 = scmp.ne.s32.totalorder %s3791_s30, %s3787_s29  ;;  %p333_p4 = scmp.eq.s32.totalorder %s3184_s18, 1 }
  0x12   : > { %s3937_s22 = scalar_select %p314_p1, %s3795_s15, %s316_s20  }
  0x13   : > { %p3939_p5 = por %p327_p2, %p326_p0  ;;  %p3943_p6 = por %p333_p4, %p332_p3 }
  0x14   : > { %p3187_p7 = scmp.ge.s32.totalorder %s3799_s16, 1  ;;  %p421_p8 = scmp.lt.s32.totalorder %s3799_s16, 3 }
  0x16   : > { %p422_p9 = pnand %p3187_p7, %p421_p8 }
  0x17   : > { %p472_p10 = scmp.lt.s32.totalorder (!%p422_p9), %s3922_s17, 1  ;;  %vm481_vm0 = vcmask (!%p422_p9), 261120   ;;  %s4573_s0 = sld [smem:[#allocation10_spill]] (!%p422_p9)  ;;  %v3801_v36 = vmov (!%p422_p9), 0.0   ;;  %vm3802_vm1 = vmmov (!%p422_p9), 0   ;;  %vm636_vm2 = vcmask (!%p422_p9), 64512  }
  0x18   : > { %425 = sbr.rel (%p422_p9) target bundleno = 2485 (0x9b5), region = 72  ;;  %s4574_s3 = sld [smem:[#allocation13_spill]] (!%p422_p9)  ;;  %3360 = vmatprep.subr.mxu0 (!%p422_p9), %v3801_v36  ;;  %3362 = vmatprep.mubr.msk.f32.mxu0 (!%p422_p9), %vm3802_vm1, %v3801_v36  ;;  %v711_v59 = vlaneseq (!%p422_p9)  ;;  %vm2678_vm4 = vcmask (!%p422_p9), 130048   ;;  %vm2681_vm5 = vcmask (!%p422_p9), 195584  }
  0x19   : > { %s4575_s1 = sld [smem:[#allocation11_spill]] (!%p422_p9)  ;;  %s4576_s2 = sld [smem:[#allocation12_spill]] (!%p422_p9) }
  0x1a   : > { %s4577_s4 = sld [smem:[#allocation14_spill]] (!%p422_p9)  ;;  %s3804_s20 = smov (!%p422_p9), 88   ;;  %v712_v60 = vshrl.u32 (!%p422_p9), %v711_v59, 7  ;;  %v714_v61 = vand.u32 (!%p422_p9), 127, %v711_v59 }
  0x1b   : > { %s3805_s21 = smov (!%p422_p9), 120   ;;  %s3808_s27 = smov (!%p422_p9), 72  }
  0x1c   : > { %s3809_s28 = smov (!%p422_p9), 104   ;;  %vm4099_vm3 = vcmp.le.s32.totalorder (!%p422_p9), %v714_v61, %v712_v60  ;;  %s4580_s5 = sld [smem:[#allocation15_spill]] (!%p422_p9) }
  0x1d   : > { %s4582_s6 = sld [smem:[#allocation16_spill]] (!%p422_p9) }
  0x1e   : > { %v525_v14 = vld [vmem:[%s4574_s3] sm:$0xff] (!%p422_p9)  ;;  %v526_v15 = vld [vmem:[%s4574_s3 + $0x8] sm:$0xff] (!%p422_p9)  ;;  %v527_v16 = vld [vmem:[%s4574_s3 + $0x10] sm:$0xff] (!%p422_p9) }
  0x1f   : > { %s473_s25 = scalar_select %p472_p10, %s3922_s17, 1  ;;  %v3527_v17 = vpack.c.bf16 %v526_v15, %v525_v14  ;;  %v528_v18 = vld [vmem:[%s4574_s3 + $0x18] sm:$0xff]  ;;  %v3192_v27 = vld [vmem:[%s4575_s1] ss:$0 sm:$0xff] }
  0x20   : > { %v3531_v19 = vpack.c.bf16 %v528_v18, %v527_v16  ;;  %v3193_v29 = vld [vmem:[%s4576_s2] ss:$0 sm:$0xff]  ;;  %s3816_s1 = smov 24  }
  0x21   : > { %s3252_s26 = sshll.u32 %s473_s25, 4  ;;  %3528 = vmatprep.subr.bf16.mxu1 %v3527_v17  ;;  %v3194_v37 = vld [vmem:[%s4577_s4] ss:$0 sm:$0xff]  ;;  %s3807_s25 = smov 112  }
  0x22   : > { %s476_s18 = scalar_lea.vmem %s4573_s0, %s3252_s26  ;;  %3530 = vmatpush3.bf16.msra.mxu1 %v3527_v17  ;;  %s3985_s26 = sand.u32 1, %s3791_s30  }
  0x23   : > { %v477_v0 = vld [vmem:[%s476_s18] sm:$0xff]  ;;  %v478_v1 = vld [vmem:[%s476_s18 + $0x8] sm:$0xff]  ;;  %3532 = vmatprep.subr.bf16.mxu1 %v3531_v19  ;;  %s3803_s18 = smov 96   ;;  %s3806_s0 = smov 80  }
  0x24   : > { %v482_v2 = vsel %vm481_vm0, %v477_v0, 0.0  ;;  %v485_v3 = vsel %vm481_vm0, %v478_v1, 0.0  ;;  %s3188_s2 = sshll.u32 %s3985_s26, 4 }
  0x25   : > { %483 = vadd.xlane.f32.xlu0 %v482_v2  ;;  %s464_s3 = scalar_lea.vmem [#allocation2], %s3188_s2 }
  0x26   : > { %3534 = vmatpush3.bf16.msra.mxu1 %v3531_v19  ;;  %s3045_s4 = sshll.u32 %s464_s3, 4  ;;  %s4479_s4 = int_to_ptr.vmem [resolvable:$true] %s3045_s4 }
  0x27   : > { %3350 = vmatprep.subr.mxu1 %v3801_v36  ;;  %s3733_s2 = scalar_lea.vmem %s4479_s4, 256 }
  0x28   : > { %p3734_p11 = scmp.ne.s32.totalorder %s4479_s4, %s3733_s2 }
  0x29   : > { %486 = vadd.xlane.f32.xlu0 %v485_v3 }
  0x2a   : > { %p3735_p12 = pnand %p3734_p11, %p3939_p5 }
  0x2c   : > { %p3736_p13 = pneg %p3735_p12 }
  0xb2   : > { %v484_v4 = vpop.xlane.xlu0 %483 }
  0xb3   : > { %v489_v5 = vmul.f32 0.03125, %v484_v4 }
  0xb5   : > { %v491_v6 = vsub.f32 %v477_v0, %v489_v5 }
  0xb6   : > { %v487_v7 = vpop.xlane.xlu0 %486 }
  0xb7   : > { %v490_v8 = vmul.f32 0.03125, %v487_v7  ;;  %v493_v9 = vmul.f32 %v491_v6, %v491_v6 }
  0xb9   : > { %v492_v10 = vsub.f32 %v478_v1, %v490_v8  ;;  %v495_v11 = vsel %vm481_vm0, %v493_v9, 0.0 }
  0xba   : > { %496 = vadd.xlane.f32.xlu1 %v495_v11 }
  0xbb   : > { %v494_v12 = vmul.f32 %v492_v10, %v492_v10 }
  0xbd   : > { %v498_v13 = vsel %vm481_vm0, %v494_v12, 0.0 }
  0xbe   : > { %499 = vadd.xlane.f32.xlu1 %v498_v13 }
 0x147   : > { %v497_v20 = vpop.xlane.xlu1 %496 }
 0x148   : > { %v501_v21 = vmul.f32 0.03125, %v497_v20 }
 0x14a   : > { %v503_v22 = vadd.f32 1e-05, %v501_v21 }
 0x14b   : > { %v500_v23 = vpop.xlane.xlu1 %499 }
 0x14c   : > { %3657 = vrsqrt.f32 %v503_v22  ;;  %v502_v24 = vmul.f32 0.03125, %v500_v23 }
 0x14e   : > { %v504_v25 = vadd.f32 1e-05, %v502_v24 }
 0x150   : > { %3659 = vrsqrt.f32 %v504_v25 }
 0x156   : > { %v3658_v26 = vpop.eup %3657 }
 0x157   : > { %v507_v28 = vmul.f32 %v3658_v26, %v491_v6 }
 0x159   : > { %v515_v30 = vmul.f32 %v3192_v27, %v507_v28 }
 0x15a   : > { %v3660_v31 = vpop.eup %3659 }
 0x15b   : > { %v508_v32 = vmul.f32 %v3660_v31, %v492_v10  ;;  %v3976_v33 = vadd.f32 %v3193_v29, %v515_v30 }
 0x15d   : > { %v516_v34 = vmul.f32 %v3192_v27, %v508_v32  ;;  %3347 = vmatprep.mubr.msk.f32.mxu1 %vm481_vm0, %v3976_v33 }
 0x15f   : > { %v3980_v35 = vadd.f32 %v3193_v29, %v516_v34 }
 0x161   : > { %3348 = vmatmul.mubr.msk.f32.vlgmr.msra.gmra.mrb[0].mxu1 %vm481_vm0, %v3980_v35 }
 0x162   : > { %3352 = vmatprep.mubr.msk.f32.mxu1 %vm3802_vm1, %v3801_v36 }
 0x234   : > { %v3349_v38 = vpop.f32.mrb[0].mxu1 }
 0x235   : > { %v3996_v39 = vadd.f32 %v3349_v38, %v3194_v37  ;;  %v608_v40 = vpop.f32.mrb[1].mxu1 }
 0x236   : > { %v3998_v41 = vadd.f32 %v3194_v37, %v608_v40 }
 0x237   : > { %621 = vrot.lane.b32.xlu1 %v3996_v39, %s3803_s18 }
 0x238   : > { %619 = vrot.lane.b32.xlu0 %v3998_v41, %s3803_s18  ;;  %s3810_s18 = smov 56  }
 0x23b   : > { %1136 = vrot.lane.b32.xlu1 %v3998_v41, %s3804_s20 }
 0x23c   : > { %1307 = vrot.lane.b32.xlu0 %v3996_v39, %s3805_s21 }
 0x23f   : > { %1134 = vrot.lane.b32.xlu1 %v3998_v41, %s3805_s21  ;;  %s3189_s21 = sshll.u32 %s3985_s26, 5 }
 0x240   : > { %1642 = vrot.lane.b32.xlu0 %v3998_v41, %s3806_s0 }
 0x243   : > { %1470 = vrot.lane.b32.xlu1 %v3996_v39, %s3804_s20  ;;  %s3811_s20 = smov 64  }
 0x244   : > { %1813 = vrot.lane.b32.xlu0 %v3996_v39, %s3807_s25 }
 0x247   : > { %1640 = vrot.lane.b32.xlu1 %v3998_v41, %s3807_s25  ;;  %s3812_s25 = smov 48  }
 0x248   : > { %2148 = vrot.lane.b32.xlu0 %v3998_v41, %s3808_s27 }
 0x24b   : > { %1976 = vrot.lane.b32.xlu1 %v3996_v39, %s3806_s0  ;;  %s4019_s0 = scalar_lea.vmem [#allocation4], %s3189_s21  ;;  %s4563_s21 = sshll.u32 %s3922_s17, 8 }
 0x24c   : > { %2319 = vrot.lane.b32.xlu0 %v3996_v39, %s3809_s28 }
 0x24f   : > { %2146 = vrot.lane.b32.xlu1 %v3998_v41, %s3809_s28  ;;  %s4561_s28 = smov 8  }
 0x250   : > { %1561 = vrot.lane.b32.xlu0 %v3996_v39, %s3810_s18 }
 0x253   : > { %2482 = vrot.lane.b32.xlu1 %v3996_v39, %s3808_s27  ;;  %s3813_s27 = smov 40  }
 0x254   : > { %627 = vrot.lane.b32.xlu0 %v3998_v41, %s3811_s20 }
 0x257   : > { %629 = vrot.lane.b32.xlu1 %v3996_v39, %s3811_s20 }
 0x25b   : > { %1228 = vrot.lane.b32.xlu1 %v3998_v41, %s3810_s18  ;;  %s4562_s18 = smov 16  }
 0x2a9   : > { %v622_v42 = vpop.permute.xlu1 %621 }
 0x2aa   : > { %626 = vst.msk [vmem:[%s4019_s0 + $0x8] sm:$0xff] %vm481_vm0, %v622_v42  ;;  %v620_v43 = vpop.permute.xlu0 %619 }
 0x2ab   : > { %625 = vst.msk [vmem:[%s4019_s0] sm:$0xff] %vm481_vm0, %v620_v43  ;;  %3351 = vmatpush3.xpose.msk.msra.mxu1 %vm636_vm2, %v620_v43  ;;  %3361 = vmatpush3.xpose.msk.msra.mxu0 %vm636_vm2, %v620_v43 }
 0x2ac   : > { %3370 = vmatprep.subr.mxu0 %v3801_v36  ;;  %3355 = vmatprep.subr.mxu1 %v3801_v36 }
 0x2ad   : > { %v1137_v44 = vpop.permute.xlu1 %1136 }
 0x2ae   : > { %3353 = vmatmul.mubr.msk.f32.vlgmr.msra.gmra.mrb[2].mxu1 %vm636_vm2, %v3998_v41  ;;  %3363 = vmatmul.mubr.msk.f32.vlgmr.msra.gmra.mrb[0].mxu0 %vm636_vm2, %v3996_v39  ;;  %v1308_v45 = vpop.permute.xlu0 %1307 }
 0x2af   : > { %3371 = vmatpush3.xpose.msk.msra.mxu0 %vm636_vm2, %v622_v42  ;;  %3372 = vmatprep.mubr.msk.f32.mxu0 %vm3802_vm1, %v3801_v36 }
 0x2b0   : > { %3380 = vmatprep.subr.mxu0 %v3801_v36  ;;  %3357 = vmatprep.mubr.msk.f32.mxu1 %vm3802_vm1, %v3801_v36 }
 0x2b1   : > { %v1135_v46 = vpop.permute.xlu1 %1134 }
 0x2b2   : > { %3373 = vmatmul.mubr.msk.f32.vlgmr.msra.gmra.mrb[2].mxu0 %vm636_vm2, %v3996_v39  ;;  %v1643_v47 = vpop.permute.xlu0 %1642 }
 0x2b3   : > { %3381 = vmatpush3.xpose.msk.msra.mxu0 %vm636_vm2, %v1137_v44  ;;  %3382 = vmatprep.mubr.msk.f32.mxu0 %vm3802_vm1, %v3801_v36 }
 0x2b4   : > { %3390 = vmatprep.subr.mxu0 %v3801_v36 }
 0x2b5   : > { %v1471_v48 = vpop.permute.xlu1 %1470 }
 0x2b6   : > { %3383 = vmatmul.mubr.msk.f32.vlgmr.msra.gmra.mrb[4].mxu0 %vm636_vm2, %v1135_v46  ;;  %v1814_v49 = vpop.permute.xlu0 %1813 }
 0x2b7   : > { %3391 = vmatpush3.xpose.msk.msra.mxu0 %vm636_vm2, %v1137_v44  ;;  %3392 = vmatprep.mubr.msk.f32.mxu0 %vm3802_vm1, %v3801_v36 }
 0x2b8   : > { %3400 = vmatprep.subr.mxu0 %v3801_v36 }
 0x2b9   : > { %v1641_v50 = vpop.permute.xlu1 %1640 }
 0x2ba   : > { %3393 = vmatmul.mubr.msk.f32.vlgmr.msra.gmra.mrb[6].mxu0 %vm636_vm2, %v1308_v45  ;;  %v2149_v51 = vpop.permute.xlu0 %2148 }
 0x2bb   : > { %3401 = vmatpush3.xpose.msk.msra.mxu0 %vm636_vm2, %v1471_v48  ;;  %3402 = vmatprep.mubr.msk.f32.mxu0 %vm3802_vm1, %v3801_v36 }
 0x2bc   : > { %3410 = vmatprep.subr.mxu0 %v3801_v36 }
 0x2bd   : > { %v1977_v52 = vpop.permute.xlu1 %1976 }
 0x2be   : > { %3403 = vmatmul.mubr.msk.f32.vlgmr.msra.gmra.mrb[8].mxu0 %vm636_vm2, %v1308_v45  ;;  %v2320_v53 = vpop.permute.xlu0 %2319 }
 0x2bf   : > { %3411 = vmatpush3.xpose.msk.msra.mxu0 %vm636_vm2, %v1643_v47  ;;  %3412 = vmatprep.mubr.msk.f32.mxu0 %vm3802_vm1, %v3801_v36 }
 0x2c0   : > { %3420 = vmatprep.subr.mxu0 %v3801_v36 }
 0x2c1   : > { %v2147_v54 = vpop.permute.xlu1 %2146 }
 0x2c2   : > { %3413 = vmatmul.mubr.msk.f32.vlgmr.msra.gmra.mrb[10].mxu0 %vm636_vm2, %v1641_v50  ;;  %v4061_v55 = vpop.permute.xlu0 %1561 }
 0x2c3   : > { %3421 = vmatpush3.xpose.msk.msra.mxu0 %vm636_vm2, %v1643_v47  ;;  %3422 = vmatprep.mubr.msk.f32.mxu0 %vm3802_vm1, %v3801_v36 }
 0x2c4   : > { %3430 = vmatprep.subr.mxu0 %v3801_v36 }
 0x2c5   : > { %v2483_v56 = vpop.permute.xlu1 %2482 }
 0x2c6   : > { %3423 = vmatmul.mubr.msk.f32.vlgmr.msra.gmra.mrb[12].mxu0 %vm636_vm2, %v1814_v49  ;;  %v4068_v57 = vpop.permute.xlu0 %627 }
 0x2c7   : > { %3197 = vst.msk [vmem:[%s4019_s0 + $0x10] sm:$0xff] %vm481_vm0, %v4068_v57  ;;  %3356 = vmatpush3.msra.mxu1 %v4068_v57  ;;  %3431 = vmatpush3.xpose.msk.msra.mxu0 %vm636_vm2, %v1977_v52 }
 0x2c8   : > { %3432 = vmatprep.mubr.msk.f32.mxu0 %vm3802_vm1, %v3801_v36  ;;  %3440 = vmatprep.subr.mxu0 %v3801_v36 }
 0x2c9   : > { %v4078_v58 = vpop.permute.xlu1 %629  ;;  %3365 = vmatprep.subr.mxu1 %v3801_v36 }
 0x2ca   : > { %3198 = vst.msk [vmem:[%s4019_s0 + $0x18] sm:$0xff] %vm481_vm0, %v4078_v58  ;;  %3433 = vmatmul.mubr.msk.f32.vlgmr.msra.gmra.mrb[14].mxu0 %vm636_vm2, %v1814_v49 }
 0x2cb   : > { %3441 = vmatpush3.xpose.msk.msra.mxu0 %vm636_vm2, %v2149_v51  ;;  %3442 = vmatprep.mubr.msk.f32.mxu0 %vm3802_vm1, %v3801_v36 }
 0x2cc   : > { %3450 = vmatprep.subr.mxu0 %v3801_v36 }
 0x2cd   : > { %v1229_v48 = vpop.permute.xlu1 %1228 }
 0x2ce   : > { %3443 = vmatmul.mubr.msk.f32.vlgmr.msra.gmra.mrb[16].mxu0 %vm636_vm2, %v2147_v54 }
 0x2cf   : > { %3451 = vmatpush3.xpose.msk.msra.mxu0 %vm636_vm2, %v2149_v51  ;;  %3452 = vmatprep.mubr.msk.f32.mxu0 %vm3802_vm1, %v3801_v36 }
 0x2d0   : > { %3460 = vmatprep.subr.mxu0 %v3801_v36 }
 0x2d2   : > { %3453 = vmatmul.mubr.msk.f32.vlgmr.msra.gmra.mrb[18].mxu0 %vm636_vm2, %v2320_v53 }
 0x2d3   : > { %3461 = vmatpush3.xpose.msk.msra.mxu0 %vm636_vm2, %v2483_v56  ;;  %3462 = vmatprep.mubr.msk.f32.mxu0 %vm3802_vm1, %v3801_v36 }
 0x2d6   : > { %3463 = vmatmul.mubr.msk.f32.vlgmr.msra.gmra.mrb[20].mxu0 %vm636_vm2, %v2320_v53 }
 0x381   : > { %v707_v63 = vpop.f32.mrb[2].mxu1  ;;  %v4103_v0 = vpop.f32.mrb[0].mxu0 }
 0x382   : > { %v4107_v1 = vsel %vm4099_vm3, %v707_v63, -10000.0  ;;  %v3354_v2 = vpop.f32.mrb[3].mxu1  ;;  %v3364_v3 = vpop.f32.mrb[1].mxu0  ;;  %v880_v4 = vsel %vm636_vm2, %v4103_v0, -inf }
 0x383   : > { %881 = vmax.xlane.f32.xlu1 %v880_v4  ;;  %v717_v5 = vsel %vm636_vm2, %v4107_v1, -inf }
 0x384   : > { %718 = vmax.xlane.f32.xlu0 %v717_v5 }
 0x385   : > { %v1037_v6 = vpop.f32.mrb[2].mxu0 }
 0x386   : > { %v4115_v7 = vsel %vm4099_vm3, %v1037_v6, -10000.0  ;;  %v3374_v8 = vpop.f32.mrb[3].mxu0 }
 0x387   : > { %v1042_v9 = vsel %vm636_vm2, %v4115_v7, -inf }
 0x388   : > { %1043 = vmax.xlane.f32.xlu0 %v1042_v9 }
 0x389   : > { %v1208_v10 = vpop.f32.mrb[4].mxu0 }
 0x38a   : > { %v4121_v11 = vsel %vm4099_vm3, %v1208_v10, -10000.0  ;;  %v3384_v12 = vpop.f32.mrb[5].mxu0 }
 0x38b   : > { %v1213_v13 = vsel %vm636_vm2, %v4121_v11, -inf }
 0x38c   : > { %1214 = vmax.xlane.f32.xlu0 %v1213_v13 }
 0x38d   : > { %v4125_v14 = vpop.f32.mrb[6].mxu0 }
 0x38e   : > { %v3394_v15 = vpop.f32.mrb[7].mxu0  ;;  %v1381_v16 = vsel %vm636_vm2, %v4125_v14, -inf }
 0x390   : > { %1382 = vmax.xlane.f32.xlu0 %v1381_v16 }
 0x391   : > { %v1540_v17 = vpop.f32.mrb[8].mxu0 }
 0x392   : > { %v4131_v18 = vsel %vm4099_vm3, %v1540_v17, -10000.0  ;;  %v3404_v19 = vpop.f32.mrb[9].mxu0 }
 0x393   : > { %v1545_v20 = vsel %vm636_vm2, %v4131_v18, -inf }
 0x394   : > { %1546 = vmax.xlane.f32.xlu1 %v1545_v20 }
 0x395   : > { %v1714_v21 = vpop.f32.mrb[10].mxu0 }
 0x396   : > { %v4137_v22 = vsel %vm4099_vm3, %v1714_v21, -10000.0  ;;  %v3414_v23 = vpop.f32.mrb[11].mxu0 }
 0x397   : > { %v1719_v24 = vsel %vm636_vm2, %v4137_v22, -inf }
 0x398   : > { %1720 = vmax.xlane.f32.xlu0 %v1719_v24 }
 0x399   : > { %v4141_v25 = vpop.f32.mrb[12].mxu0 }
 0x39a   : > { %v3424_v26 = vpop.f32.mrb[13].mxu0  ;;  %v1887_v43 = vsel %vm636_vm2, %v4141_v25, -inf }
 0x39d   : > { %v2046_v27 = vpop.f32.mrb[14].mxu0 }
 0x39e   : > { %v4145_v28 = vsel %vm4099_vm3, %v2046_v27, -10000.0  ;;  %v3434_v29 = vpop.f32.mrb[15].mxu0 }
 0x39f   : > { %v2051_v44 = vsel %vm636_vm2, %v4145_v28, -inf }
 0x3a1   : > { %v2220_v30 = vpop.f32.mrb[16].mxu0 }
 0x3a2   : > { %v4149_v31 = vsel %vm4099_vm3, %v2220_v30, -10000.0  ;;  %v3444_v32 = vpop.f32.mrb[17].mxu0 }
 0x3a3   : > { %v2225_v46 = vsel %vm636_vm2, %v4149_v31, -inf }
 0x3a5   : > { %1734 = vrot.lane.b32.xlu1 %v3998_v41, %s3812_s25  ;;  %v4152_v34 = vpop.f32.mrb[18].mxu0 }
 0x3a6   : > { %v3454_v37 = vpop.f32.mrb[19].mxu0  ;;  %v2393_v45 = vsel %vm636_vm2, %v4152_v34, -inf }
 0x3a9   : > { %v2552_v38 = vpop.f32.mrb[20].mxu0 }
 0x3aa   : > { %v4156_v40 = vsel %vm4099_vm3, %v2552_v38, -10000.0  ;;  %v3464_v42 = vpop.f32.mrb[21].mxu0 }
 0x3ab   : > { %v2557_v47 = vsel %vm636_vm2, %v4156_v40, -inf }
 0x3ae   : > { %2067 = vrot.lane.b32.xlu0 %v3996_v39, %s3812_s25 }
 0x3c9   : > { %1888 = vmax.xlane.f32.xlu1 %v1887_v43 }
 0x3cd   : > { %2052 = vmax.xlane.f32.xlu1 %v2051_v44  ;;  %2394 = vmax.xlane.f32.xlu0 %v2393_v45 }
 0x3d1   : > { %2226 = vmax.xlane.f32.xlu1 %v2225_v46 }
 0x3d5   : > { %2558 = vmax.xlane.f32.xlu1 %v2557_v47 }
 0x3e3   : > { %2240 = vrot.lane.b32.xlu0 %v3998_v41, %s3813_s27 }
 0x3e6   : > { %2573 = vrot.lane.b32.xlu1 %v3996_v39, %s3813_s27 }
 0x410   : > { %v882_v49 = vpop.xlane.xlu1 %881 }
 0x411   : > { %v4171_v50 = vmax.f32 %v882_v49, -1e+30  ;;  %v4173_v51 = vpop.xlane.xlu0 %718 }
 0x412   : > { %v720_v52 = vmax.f32 %v4173_v51, -1e+30 }
 0x413   : > { %v887_v54 = vsub.f32 %v4103_v0, %v4171_v50 }
 0x414   : > { %v724_v53 = vsub.f32 %v4107_v1, %v720_v52 }
 0x415   : > { %v1044_v56 = vpop.xlane.xlu0 %1043  ;;  %v888_v61 = vmul.f32 1.442695, %v887_v54 }
 0x416   : > { %v725_v59 = vmul.f32 1.442695, %v724_v53  ;;  %v4182_v41 = vmax.f32 %v4171_v50, %v1044_v56 }
 0x418   : > { %v1046_v39 = vsub.f32 %v4171_v50, %v4182_v41  ;;  %v1049_v60 = vsub.f32 %v4115_v7, %v4182_v41  ;;  %3661 = vpow2.f32 %v725_v59 }
 0x419   : > { %v4188_v62 = vpop.xlane.xlu0 %1214  ;;  %3663 = vpow2.f32 %v888_v61 }
 0x41a   : > { %v1216_v63 = vmax.f32 %v4188_v62, -1e+30  ;;  %v1050_v1 = vmul.f32 1.442695, %v1049_v60 }
 0x41c   : > { %v1220_v0 = vsub.f32 %v4121_v11, %v1216_v63  ;;  %3665 = vpow2.f32 %v1050_v1 }
 0x41d   : > { %v1383_v2 = vpop.xlane.xlu0 %1382 }
 0x41e   : > { %v1221_v3 = vmul.f32 1.442695, %v1220_v0  ;;  %v4194_v4 = vmax.f32 %v1383_v2, -1e+30 }
 0x420   : > { %v1388_v5 = vsub.f32 %v4125_v14, %v4194_v4  ;;  %3667 = vpow2.f32 %v1221_v3 }
 0x421   : > { %v1547_v6 = vpop.xlane.xlu1 %1546 }
 0x422   : > { %v1389_v7 = vmul.f32 1.442695, %v1388_v5  ;;  %v4199_v8 = vmax.f32 %v4194_v4, %v1547_v6  ;;  %v4201_v9 = vpop.eup %3661 }
 0x423   : > { %3358 = vmatmul.mubr.msk.f32.vlgmr.msra.gmra.mrb[4].mxu1 %vm636_vm2, %v4201_v9  ;;  %v4216_v15 = vpop.eup %3663 }
 0x424   : > { %3669 = vpow2.f32 %v1389_v7  ;;  %v1549_v10 = vsub.f32 %v4194_v4, %v4199_v8  ;;  %v1552_v11 = vsub.f32 %v4131_v18, %v4199_v8  ;;  %3366 = vmatpush3.msra.mxu1 %v4068_v57  ;;  %3367 = vmatprep.mubr.msk.f32.mxu1 %vm3802_vm1, %v3801_v36 }
 0x425   : > { %v4210_v12 = vpop.xlane.xlu0 %1720  ;;  %3375 = vmatprep.subr.mxu1 %v3801_v36  ;;  %v1735_v24 = vpop.permute.xlu1 %1734 }
 0x426   : > { %v1553_v13 = vmul.f32 1.442695, %v1552_v11  ;;  %v1722_v14 = vmax.f32 %v4210_v12, -1e+30  ;;  %v4226_v57 = vpop.eup %3665 }
 0x427   : > { %3368 = vmatmul.mubr.msk.f32.vlgmr.msra.gmra.mrb[6].mxu1 %vm636_vm2, %v4216_v15 }
 0x428   : > { %v1726_v16 = vsub.f32 %v4137_v22, %v1722_v14  ;;  %3671 = vpow2.f32 %v1553_v13  ;;  %3376 = vmatpush3.msra.mxu1 %v4078_v58  ;;  %3377 = vmatprep.mubr.msk.f32.mxu1 %vm3802_vm1, %v3801_v36 }
 0x429   : > { %3385 = vmatprep.subr.mxu1 %v3801_v36 }
 0x42a   : > { %v1727_v17 = vmul.f32 1.442695, %v1726_v16  ;;  %v3668_v18 = vpop.eup %3667  ;;  %v891_v16 = vsel %vm636_vm2, %v4216_v15, 0.0  ;;  %v1550_v15 = vmul.f32 1.442695, %v1549_v10 }
 0x42b   : > { %3378 = vmatmul.mubr.msk.f32.vlgmr.msra.gmra.mrb[8].mxu1 %vm636_vm2, %v4226_v57  ;;  %v1224_v19 = vsel %vm636_vm2, %v3668_v18, 0.0 }
 0x42c   : > { %3673 = vpow2.f32 %v1727_v17  ;;  %3386 = vmatpush3.msra.mxu1 %v1229_v48  ;;  %1225 = vadd.xlane.f32.xlu0 %v1224_v19  ;;  %v728_v17 = vsel %vm636_vm2, %v4201_v9, 0.0  ;;  %v1385_v19 = vsub.f32 -1e+30, %v4194_v4  ;;  %v721_v4 = vsub.f32 -1e+30, %v720_v52 }
 0x42d   : > { %3387 = vmatprep.mubr.msk.f32.mxu1 %vm3802_vm1, %v3801_v36  ;;  %3395 = vmatprep.subr.mxu1 %v3801_v36  ;;  %v1047_v52 = vmul.f32 1.442695, %v1046_v39 }
 0x42e   : > { %v3670_v20 = vpop.eup %3669 }
 0x42f   : > { %v1392_v58 = vsel %vm636_vm2, %v3670_v20, 0.0  ;;  %3388 = vmatmul.mubr.msk.f32.vlgmr.msra.gmra.mrb[10].mxu1 %vm636_vm2, %v3668_v18  ;;  %v1053_v18 = vsel %vm636_vm2, %v4226_v57, 0.0 }
 0x430   : > { %3396 = vmatpush3.msra.mxu1 %v1229_v48  ;;  %1393 = vadd.xlane.f32.xlu0 %v1392_v58 }
 0x431   : > { %3397 = vmatprep.mubr.msk.f32.mxu1 %vm3802_vm1, %v3801_v36  ;;  %3405 = vmatprep.subr.mxu1 %v3801_v36 }
 0x432   : > { %v3672_v21 = vpop.eup %3671 }
 0x433   : > { %3398 = vmatmul.mubr.msk.f32.vlgmr.msra.gmra.mrb[12].mxu1 %vm636_vm2, %v3670_v20  ;;  %v1556_v22 = vsel %vm636_vm2, %v3672_v21, 0.0  ;;  %v1386_v20 = vmul.f32 1.442695, %v1385_v19 }
 0x434   : > { %3406 = vmatpush3.msra.mxu1 %v4061_v55  ;;  %1557 = vadd.xlane.f32.xlu0 %v1556_v22  ;;  %v2068_v55 = vpop.permute.xlu0 %2067 }
 0x435   : > { %3407 = vmatprep.mubr.msk.f32.mxu1 %vm3802_vm1, %v3801_v36  ;;  %3415 = vmatprep.subr.mxu1 %v3801_v36 }
 0x436   : > { %v3674_v23 = vpop.eup %3673 }
 0x437   : > { %3408 = vmatmul.mubr.msk.f32.vlgmr.msra.gmra.mrb[14].mxu1 %vm636_vm2, %v3672_v21  ;;  %v1730_v26 = vsel %vm636_vm2, %v3674_v23, 0.0 }
 0x438   : > { %3416 = vmatpush3.msra.mxu1 %v1735_v24  ;;  %1731 = vadd.xlane.f32.xlu1 %v1730_v26 }
 0x439   : > { %3417 = vmatprep.mubr.msk.f32.mxu1 %vm3802_vm1, %v3801_v36  ;;  %3425 = vmatprep.subr.mxu1 %v3801_v36 }
 0x43b   : > { %3418 = vmatmul.mubr.msk.f32.vlgmr.msra.gmra.mrb[16].mxu1 %vm636_vm2, %v3674_v23 }
 0x43c   : > { %3426 = vmatpush3.msra.mxu1 %v1735_v24  ;;  %3427 = vmatprep.mubr.msk.f32.mxu1 %vm3802_vm1, %v3801_v36  ;;  %v1217_v24 = vsub.f32 -1e+30, %v1216_v63  ;;  %v1723_v63 = vsub.f32 -1e+30, %v1722_v14 }
 0x43d   : > { %3435 = vmatprep.subr.mxu1 %v3801_v36 }
 0x43e   : > { %v1218_v8 = vmul.f32 1.442695, %v1217_v24 }
 0x456   : > { %v1889_v27 = vpop.xlane.xlu1 %1888 }
 0x457   : > { %v4255_v29 = vmax.f32 %v1889_v27, -1e+30  ;;  %v884_v27 = vsub.f32 -1e+30, %v4171_v50 }
 0x459   : > { %v1894_v30 = vsub.f32 %v4141_v25, %v4255_v29  ;;  %v1891_v26 = vsub.f32 -1e+30, %v4255_v29 }
 0x45a   : > { %v2053_v32 = vpop.xlane.xlu1 %2052  ;;  %v2395_v37 = vpop.xlane.xlu0 %2394 }
 0x45b   : > { %v1895_v38 = vmul.f32 1.442695, %v1894_v30  ;;  %v4260_v42 = vmax.f32 %v4255_v29, %v2053_v32  ;;  %v4262_v43 = vmax.f32 %v2395_v37, -1e+30  ;;  %v1892_v10 = vmul.f32 1.442695, %v1891_v26 }
 0x45c   : > { %v885_v30 = vmul.f32 1.442695, %v884_v27  ;;  %v1724_v37 = vmul.f32 1.442695, %v1723_v63 }
 0x45d   : > { %3675 = vpow2.f32 %v1895_v38  ;;  %v2055_v44 = vsub.f32 %v4255_v29, %v4260_v42  ;;  %v2058_v45 = vsub.f32 %v4145_v28, %v4260_v42  ;;  %v2400_v46 = vsub.f32 %v4152_v34, %v4262_v43 }
 0x45e   : > { %v4270_v47 = vpop.xlane.xlu1 %2226  ;;  %v2241_v0 = vpop.permute.xlu0 %2240  ;;  %v2397_v32 = vsub.f32 -1e+30, %v4262_v43 }
 0x45f   : > { %v2059_v25 = vmul.f32 1.442695, %v2058_v45  ;;  %v2401_v48 = vmul.f32 1.442695, %v2400_v46  ;;  %v2228_v49 = vmax.f32 %v4270_v47, -1e+30 }
 0x460   : > { %v2056_v62 = vmul.f32 1.442695, %v2055_v44  ;;  %v2398_v51 = vmul.f32 1.442695, %v2397_v32  ;;  %v2685_v47 = vld [vmem:[%s4580_s5 + $0x8] sm:$0xff] }
 0x461   : > { %3677 = vpow2.f32 %v2059_v25  ;;  %v2232_v53 = vsub.f32 %v4149_v31, %v2228_v49 }
 0x462   : > { %v2559_v54 = vpop.xlane.xlu1 %2558  ;;  %3679 = vpow2.f32 %v2401_v48 }
 0x463   : > { %v4277_v56 = vmax.f32 %v4262_v43, %v2559_v54  ;;  %v2233_v28 = vmul.f32 1.442695, %v2232_v53 }
 0x465   : > { %v2561_v34 = vsub.f32 %v4262_v43, %v4277_v56  ;;  %v2564_v59 = vsub.f32 %v4156_v40, %v4277_v56  ;;  %3681 = vpow2.f32 %v2233_v28 }
 0x466   : > { %v2574_v13 = vpop.permute.xlu1 %2573 }
 0x467   : > { %v3676_v60 = vpop.eup %3675  ;;  %v2565_v61 = vmul.f32 1.442695, %v2564_v59  ;;  %v2562_v29 = vmul.f32 1.442695, %v2561_v34 }
 0x468   : > { %3428 = vmatmul.mubr.msk.f32.vlgmr.msra.gmra.mrb[18].mxu1 %vm636_vm2, %v3676_v60  ;;  %v1898_v1 = vsel %vm636_vm2, %v3676_v60, 0.0 }
 0x469   : > { %3436 = vmatpush3.msra.mxu1 %v2068_v55  ;;  %1899 = vadd.xlane.f32.xlu1 %v1898_v1  ;;  %3683 = vpow2.f32 %v2565_v61  ;;  %v722_v55 = vmul.f32 1.442695, %v721_v4 }
 0x46a   : > { %3437 = vmatprep.mubr.msk.f32.mxu1 %vm3802_vm1, %v3801_v36  ;;  %3445 = vmatprep.subr.mxu1 %v3801_v36  ;;  %3685 = vpow2.f32 %v1386_v20 }
 0x46b   : > { %v3678_v31 = vpop.eup %3677  ;;  %3687 = vpow2.f32 %v1550_v15 }
 0x46c   : > { %3438 = vmatmul.mubr.msk.f32.vlgmr.msra.gmra.mrb[20].mxu1 %vm636_vm2, %v3678_v31  ;;  %v2062_v40 = vsel %vm636_vm2, %v3678_v31, 0.0  ;;  %v3680_v2 = vpop.eup %3679  ;;  %3689 = vpow2.f32 %v1218_v8 }
 0x46d   : > { %3446 = vmatpush3.msra.mxu1 %v2241_v0  ;;  %2063 = vadd.xlane.f32.xlu0 %v2062_v40  ;;  %v2404_v5 = vsel %vm636_vm2, %v3680_v2, 0.0  ;;  %3691 = vpow2.f32 %v1892_v10 }
 0x46e   : > { %3447 = vmatprep.mubr.msk.f32.mxu1 %vm3802_vm1, %v3801_v36  ;;  %3455 = vmatprep.subr.mxu1 %v3801_v36  ;;  %3693 = vpow2.f32 %v722_v55 }
 0x46f   : > { %v3682_v3 = vpop.eup %3681  ;;  %3695 = vpow2.f32 %v885_v30 }
 0x470   : > { %3448 = vmatmul.mubr.msk.f32.vlgmr.msra.gmra.mrb[22].mxu1 %vm636_vm2, %v3682_v3  ;;  %v2236_v6 = vsel %vm636_vm2, %v3682_v3, 0.0  ;;  %3697 = vpow2.f32 %v2056_v62 }
 0x471   : > { %2405 = vadd.xlane.f32.xlu0 %v2404_v5  ;;  %3456 = vmatpush3.msra.mxu1 %v2241_v0  ;;  %3699 = vpow2.f32 %v2398_v51 }
 0x472   : > { %2237 = vadd.xlane.f32.xlu1 %v2236_v6  ;;  %3457 = vmatprep.mubr.msk.f32.mxu1 %vm3802_vm1, %v3801_v36  ;;  %3701 = vpow2.f32 %v1047_v52 }
 0x473   : > { %v3684_v7 = vpop.eup %3683  ;;  %3465 = vmatprep.subr.mxu1 %v3801_v36  ;;  %3703 = vpow2.f32 %v1724_v37 }
 0x474   : > { %v2568_v11 = vsel %vm636_vm2, %v3684_v7, 0.0  ;;  %3458 = vmatmul.mubr.msk.f32.vlgmr.msra.gmra.mrb[24].mxu1 %vm636_vm2, %v3680_v2  ;;  %3705 = vpow2.f32 %v2562_v29 }
 0x475   : > { %2569 = vadd.xlane.f32.xlu0 %v2568_v11  ;;  %3466 = vmatpush3.msra.mxu1 %v2574_v13 }
 0x476   : > { %892 = vadd.xlane.f32.xlu1 %v891_v16  ;;  %3467 = vmatprep.mubr.msk.f32.mxu1 %vm3802_vm1, %v3801_v36  ;;  %v3686_v36 = vpop.eup %3685 }
 0x477   : > { %v4314_v21 = vmul.f32 0.0, %v3686_v36  ;;  %v4317_v23 = vpop.eup %3687 }
 0x478   : > { %3468 = vmatmul.mubr.msk.f32.vlgmr.msra.gmra.mrb[26].mxu1 %vm636_vm2, %v3684_v7  ;;  %v3690_v38 = vpop.eup %3689 }
 0x479   : > { %729 = vadd.xlane.f32.xlu0 %v728_v17  ;;  %v3692_v45 = vpop.eup %3691  ;;  %v1223_v12 = vmul.f32 0.0, %v3690_v38 }
 0x47a   : > { %1054 = vadd.xlane.f32.xlu1 %v1053_v18  ;;  %v3694_v25 = vpop.eup %3693  ;;  %v4338_v14 = vmul.f32 0.0, %v3692_v45 }
 0x47b   : > { %v727_v42 = vmul.f32 0.0, %v3694_v25  ;;  %v3696_v48 = vpop.eup %3695 }
 0x47c   : > { %v4341_v54 = vpop.eup %3697  ;;  %v890_v56 = vmul.f32 0.0, %v3696_v48 }
 0x47d   : > { %v3700_v34 = vpop.eup %3699 }
 0x47e   : > { %v3702_v0 = vpop.eup %3701  ;;  %v4348_v3 = vmul.f32 0.0, %v3700_v34 }
 0x47f   : > { %v3704_v40 = vpop.eup %3703 }
 0x480   : > { %v4351_v18 = vpop.eup %3705  ;;  %v1729_v19 = vmul.f32 0.0, %v3704_v40 }
 0x4b9   : > { %v1226_v58 = vpop.xlane.xlu0 %1225 }
 0x4ba   : > { %v1227_v50 = vadd.f32 %v1226_v58, %v1223_v12 }
 0x4bc   : > { %3707 = vrcp.f32 %v1227_v50 }
 0x4bd   : > { %v1394_v9 = vpop.xlane.xlu0 %1393 }
 0x4be   : > { %v1395_v22 = vadd.f32 %v1394_v9, %v4314_v21 }
 0x4c0   : > { %v1555_v57 = vmul.f32 %v4317_v23, %v1395_v22 }
 0x4c1   : > { %v1558_v41 = vpop.xlane.xlu0 %1557 }
 0x4c2   : > { %v1559_v5 = vadd.f32 %v1558_v41, %v1555_v57  ;;  %v2229_v41 = vsub.f32 -1e+30, %v2228_v49 }
 0x4c4   : > { %3709 = vrcp.f32 %v1559_v5 }
 0x4c5   : > { %v1732_v46 = vpop.xlane.xlu1 %1731 }
 0x4c6   : > { %v1733_v15 = vadd.f32 %v1732_v46, %v1729_v19  ;;  %v3708_v24 = vpop.eup %3707 }
 0x4c8   : > { %3711 = vrcp.f32 %v1733_v15 }
 0x4ce   : > { %v3710_v45 = vpop.eup %3709 }
 0x4f6   : > { %v1900_v44 = vpop.xlane.xlu1 %1899  ;;  %v801_v39 = vpop.f32.mrb[4].mxu1 }
 0x4f7   : > { %v1901_v53 = vadd.f32 %v1900_v44, %v4338_v14  ;;  %v4343_v28 = vadd.f32 %v801_v39, %v727_v42  ;;  %v3359_v59 = vpop.f32.mrb[5].mxu1  ;;  %v2230_v39 = vmul.f32 1.442695, %v2229_v41 }
 0x4f9   : > { %v4346_v43 = vmul.f32 %v4341_v54, %v1901_v53 }
 0x4fa   : > { %v964_v60 = vpop.f32.mrb[6].mxu1  ;;  %v2064_v61 = vpop.xlane.xlu0 %2063 }
 0x4fb   : > { %v968_v1 = vadd.f32 %v964_v60, %v890_v56  ;;  %v3369_v31 = vpop.f32.mrb[7].mxu1  ;;  %v2065_v59 = vadd.f32 %v2064_v61, %v4346_v43  ;;  %v2686_v43 = vld [vmem:[%s4580_s5 + $0x10] sm:$0xff] }
 0x4fd   : > { %v1057_v2 = vmul.f32 %v3702_v0, %v968_v1 }
 0x4fe   : > { %v1127_v6 = vpop.f32.mrb[8].mxu1  ;;  %v2406_v7 = vpop.xlane.xlu0 %2405 }
 0x4ff   : > { %v1131_v11 = vadd.f32 %v1127_v6, %v1057_v2  ;;  %v2238_v13 = vpop.xlane.xlu1 %2237  ;;  %v2407_v16 = vadd.f32 %v2406_v7, %v4348_v3  ;;  %v3379_v17 = vpop.f32.mrb[9].mxu1 }
 0x501   : > { %v4354_v20 = vmul.f32 %v4351_v18, %v2407_v16 }
 0x502   : > { %v1300_v36 = vpop.f32.mrb[10].mxu1  ;;  %v2570_v58 = vpop.xlane.xlu0 %2569 }
 0x503   : > { %v1304_v9 = vadd.f32 %v1300_v36, %v1223_v12  ;;  %v893_v22 = vpop.xlane.xlu1 %892  ;;  %v3389_v57 = vpop.f32.mrb[11].mxu1  ;;  %v2571_v2 = vadd.f32 %v2570_v58, %v4354_v20 }
 0x504   : > { %v894_v26 = vadd.f32 %v893_v22, %v890_v56 }
 0x505   : > { %v1306_v4 = vmul.f32 %v3708_v24, %v1304_v9 }
 0x506   : > { %v1465_v8 = vpop.f32.mrb[12].mxu1  ;;  %v1052_v10 = vmul.f32 %v3702_v0, %v894_v26  ;;  %v730_v55 = vpop.xlane.xlu0 %729 }
 0x507   : > { %v1469_v27 = vadd.f32 %v1465_v8, %v4314_v21  ;;  %v1055_v30 = vpop.xlane.xlu1 %1054  ;;  %v731_v32 = vadd.f32 %v730_v55, %v727_v42  ;;  %v3399_v62 = vpop.f32.mrb[13].mxu1  ;;  %2654 = vrot.lane.b32.xlu0 %v1306_v4, %s4561_s28 }
 0x508   : > { %v1056_v63 = vadd.f32 %v1055_v30, %v1052_v10  ;;  %v3712_v21 = vpop.eup %3711 }
 0x509   : > { %3713 = vrcp.f32 %v731_v32  ;;  %v1560_v51 = vmul.f32 %v4317_v23, %v1469_v27 }
 0x50a   : > { %3715 = vrcp.f32 %v1056_v63  ;;  %v1633_v52 = vpop.f32.mrb[14].mxu1 }
 0x50b   : > { %v1637_v37 = vadd.f32 %v1633_v52, %v1560_v51  ;;  %v3409_v38 = vpop.f32.mrb[15].mxu1  ;;  %3717 = vpow2.f32 %v2230_v39  ;;  %v3235_v52 = vld [vmem:[%s4582_s6] ss:$0 sm:$0xff] }
 0x50c   : > { %3719 = vrcp.f32 %v2065_v59 }
 0x50d   : > { %v1639_v46 = vmul.f32 %v3710_v45, %v1637_v37 }
 0x50e   : > { %v1806_v25 = vpop.f32.mrb[16].mxu1 }
 0x50f   : > { %v1810_v29 = vadd.f32 %v1806_v25, %v1729_v19  ;;  %v3419_v12 = vpop.f32.mrb[17].mxu1  ;;  %2656 = vrot.lane.b32.xlu1 %v1639_v46, %s4561_s28  ;;  %s4581_s28 = smov 16  }
 0x511   : > { %v1812_v42 = vmul.f32 %v3712_v21, %v1810_v29 }
 0x513   : > { %v3714_v44 = vpop.eup %3713  ;;  %2662 = vrot.lane.b32.xlu1 %v1812_v42, %s4562_s18  ;;  %s3817_s18 = smov [#allocation2]  }
 0x514   : > { %v3716_v48 = vpop.eup %3715  ;;  %v807_v23 = vmul.f32 %v3714_v44, %v4343_v28  ;;  %v2684_v28 = vld [vmem:[%s4580_s5] sm:$0xff]  ;;  %s3737_s20 = sshll.u32 %s3817_s18, 4  ;;  %s3738_s20 = int_to_ptr.vmem [resolvable:$false] %s3737_s20 }
 0x515   : > { %v1133_v50 = vmul.f32 %v3716_v48, %v1131_v11  ;;  %v3718_v53 = vpop.eup %3717  ;;  %v3535_v49 = vpack.c.bf16 %v2685_v47, %v2684_v28  ;;  %v2924_v28 = vld [vmem:[%s4557_s11] sm:$0xff]  ;;  %v2925_v47 = vld [vmem:[%s4557_s11 + $0x8] sm:$0xff]  ;;  %s3739_s25 = scalar_lea.vmem %s3738_s20, 512  ;;  %p3740_p0 = scmp.lt.s32.totalorder %s4479_s4, %s3738_s20 }
 0x516   : > { %v2235_v56 = vmul.f32 0.0, %v3718_v53  ;;  %v3720_v7 = vpop.eup %3719  ;;  %p3741_p1 = scmp.lt.s32.totalorder %s3739_s25, %s3733_s2 }
 0x517   : > { %3536 = vmatprep.subr.bf16.mxu1 %v3535_v49 }
 0x518   : > { %v2239_v34 = vadd.f32 %v2238_v13, %v2235_v56  ;;  %3538 = vmatpush3.bf16.msra.mxu1 %v3535_v49  ;;  %v2926_v49 = vld [vmem:[%s4557_s11 + $0x10] sm:$0xff]  ;;  %p3742_p2 = por %p3741_p1, %p3740_p0 }
 0x51a   : > { %3721 = vrcp.f32 %v2239_v34  ;;  %p3743_p3 = pnand %p3742_p2, %p3736_p13 }
 0x51b   : > { %3723 = vrcp.f32 %v2571_v2 }
 0x524   : > { %v3722_v17 = vpop.eup %3721 }
 0x525   : > { %v3724_v24 = vpop.eup %3723 }
 0x53b   : > { %v1971_v60 = vpop.f32.mrb[18].mxu1 }
 0x53c   : > { %v1975_v1 = vadd.f32 %v1971_v60, %v4338_v14  ;;  %v3429_v31 = vpop.f32.mrb[19].mxu1  ;;  %v2687_v14 = vld [vmem:[%s4580_s5 + $0x18] sm:$0xff]  ;;  %v2824_v60 = vld [vmem:[%s4555_s9 + $0x10] sm:$0xff] }
 0x53d   : > { %v3539_v61 = vpack.c.bf16 %v2687_v14, %v2686_v43  ;;  %v2927_v43 = vld [vmem:[%s4557_s11 + $0x18] sm:$0xff] }
 0x53e   : > { %v2066_v0 = vmul.f32 %v4341_v54, %v1975_v1  ;;  %v2825_v1 = vld [vmem:[%s4555_s9 + $0x18] sm:$0xff]  ;;  %v3555_v14 = vpack.c.bf16 %v2927_v43, %v2926_v49 }
 0x53f   : > { %v2139_v40 = vpop.f32.mrb[20].mxu1  ;;  %3540 = vmatprep.subr.bf16.mxu1 %v3539_v61  ;;  %v3547_v31 = vpack.c.bf16 %v2825_v1, %v2824_v60 }
 0x540   : > { %v2143_v5 = vadd.f32 %v2139_v40, %v2066_v0  ;;  %v3439_v6 = vpop.f32.mrb[21].mxu1  ;;  %3542 = vmatpush3.bf16.msra.mxu1 %v3539_v61  ;;  %v3551_v0 = vpack.c.bf16 %v2925_v47, %v2924_v28  ;;  %v2928_v61 = vld [vmem:[%s4557_s11 + $0x20] sm:$0xff]  ;;  %v2929_v40 = vld [vmem:[%s4557_s11 + $0x28] sm:$0xff] }
 0x541   : > { %v3559_v2 = vpack.c.bf16 %v2929_v40, %v2928_v61 }
 0x542   : > { %v2145_v11 = vmul.f32 %v3720_v7, %v2143_v5  ;;  %3552 = vmatprep.subr.bf16.mxu0 %v3551_v0 }
 0x543   : > { %v2312_v54 = vpop.f32.mrb[22].mxu1  ;;  %3554 = vmatpush3.bf16.msra.mxu0 %v3551_v0 }
 0x544   : > { %2664 = vrot.lane.b32.xlu1 %v2145_v11, %s4581_s28  ;;  %v2316_v13 = vadd.f32 %v2312_v54, %v2235_v56  ;;  %v3449_v16 = vpop.f32.mrb[23].mxu1  ;;  %v2823_v56 = vld [vmem:[%s4555_s9 + $0x8] sm:$0xff]  ;;  %3556 = vmatprep.subr.bf16.mxu0 %v3555_v14  ;;  %s4477_s28 = scalar_lea.hbm %s4559_s13, %s4563_s21 }
 0x546   : > { %v2318_v19 = vmul.f32 %v3722_v17, %v2316_v13  ;;  %v3238_v17 = vld [vmem:[%s4553_s7] ss:$0 sm:$0xff] }
 0x547   : > { %v2477_v15 = vpop.f32.mrb[24].mxu1  ;;  %3558 = vmatpush3.bf16.msra.mxu0 %v3555_v14 }
 0x548   : > { %v2481_v36 = vadd.f32 %v2477_v15, %v4348_v3  ;;  %v3459_v9 = vpop.f32.mrb[25].mxu1  ;;  %2670 = vrot.lane.b32.xlu0 %v2318_v19, %s3816_s1  ;;  %3560 = vmatprep.subr.bf16.mxu0 %v3559_v2  ;;  %v3239_v15 = vld [vmem:[%s4554_s8] ss:$0 sm:$0xff] }
 0x54a   : > { %v2572_v20 = vmul.f32 %v4351_v18, %v2481_v36 }
 0x54b   : > { %v2645_v58 = vpop.f32.mrb[26].mxu1  ;;  %3562 = vmatpush3.bf16.msra.mxu0 %v3559_v2 }
 0x54c   : > { %v2649_v22 = vadd.f32 %v2645_v58, %v2572_v20  ;;  %v3469_v57 = vpop.f32.mrb[27].mxu1 }
 0x54e   : > { %v2651_v26 = vmul.f32 %v3724_v24, %v2649_v22  ;;  %v2930_v24 = vld [vmem:[%s4557_s11 + $0x30] sm:$0xff] }
 0x550   : > { %2672 = vrot.lane.b32.xlu1 %v2651_v26, %s3816_s1  ;;  %v2931_v26 = vld [vmem:[%s4557_s11 + $0x38] sm:$0xff] }
 0x579   : > { %v2655_v8 = vpop.permute.xlu0 %2654 }
 0x57a   : > { %v2676_v55 = vsel %vm636_vm2, %v807_v23, %v2655_v8  ;;  %v2932_v8 = vld [vmem:[%s4557_s11 + $0x40] sm:$0xff] }
 0x581   : > { %v2657_v4 = vpop.permute.xlu1 %2656 }
 0x582   : > { %v2677_v18 = vsel %vm636_vm2, %v1133_v50, %v2657_v4  ;;  %v3563_v4 = vpack.c.bf16 %v2931_v26, %v2930_v24 }
 0x584   : > { %3564 = vmatprep.subr.bf16.mxu0 %v3563_v4 }
 0x585   : > { %v2663_v10 = vpop.permute.xlu1 %2662  ;;  %3566 = vmatpush3.bf16.msra.mxu0 %v3563_v4 }
 0x586   : > { %v2679_v27 = vsel %vm2678_vm4, %v2676_v55, %v2663_v10  ;;  %v2933_v10 = vld [vmem:[%s4557_s11 + $0x48] sm:$0xff] }
 0x587   : > { %v3567_v55 = vpack.c.bf16 %v2933_v10, %v2932_v8 }
 0x589   : > { %3568 = vmatprep.subr.bf16.mxu0 %v3567_v55 }
 0x58a   : > { %3570 = vmatpush3.bf16.msra.mxu0 %v3567_v55 }
 0x5b6   : > { %v2665_v32 = vpop.permute.xlu1 %2664 }
 0x5b7   : > { %v2680_v62 = vsel %vm2678_vm4, %v2677_v18, %v2665_v32  ;;  %v2936_v32 = vld [vmem:[%s4557_s11 + $0x60] sm:$0xff]  ;;  %v2937_v18 = vld [vmem:[%s4557_s11 + $0x68] sm:$0xff] }
 0x5ba   : > { %v2671_v3 = vpop.permute.xlu0 %2670 }
 0x5bb   : > { %v2682_v30 = vsel %vm2681_vm5, %v2679_v27, %v2671_v3  ;;  %v2934_v27 = vld [vmem:[%s4557_s11 + $0x50] sm:$0xff]  ;;  %v2935_v3 = vld [vmem:[%s4557_s11 + $0x58] sm:$0xff] }
 0x5bc   : > { %3478 = vmatprep.mubr.msk.f32.mxu1 %vm481_vm0, %v2682_v30  ;;  %v3571_v30 = vpack.c.bf16 %v2935_v3, %v2934_v27 }
 0x5be   : > { %3572 = vmatprep.subr.bf16.mxu0 %v3571_v30 }
 0x5bf   : > { %3574 = vmatpush3.bf16.msra.mxu0 %v3571_v30 }
 0x5c2   : > { %v2673_v63 = vpop.permute.xlu1 %2672 }
 0x5c3   : > { %v2683_v51 = vsel %vm2681_vm5, %v2680_v62, %v2673_v63  ;;  %v3575_v62 = vpack.c.bf16 %v2937_v18, %v2936_v32  ;;  %v2938_v63 = vld [vmem:[%s4557_s11 + $0x70] sm:$0xff] }
 0x5c4   : > { %3479 = vmatmul.mubr.msk.f32.vlgmr.msra.gmra.mrb[28].mxu1 %vm481_vm0, %v2683_v51  ;;  %v2939_v51 = vld [vmem:[%s4557_s11 + $0x78] sm:$0xff] }
 0x5c5   : > { %3576 = vmatprep.subr.bf16.mxu0 %v3575_v62 }
 0x5c6   : > { %3578 = vmatpush3.bf16.msra.mxu0 %v3575_v62 }
 0x697   : > { %v3480_v37 = vpop.f32.mrb[28].mxu1 }
 0x698   : > { %v2773_v38 = vadd.f32 %v3480_v37, %v3235_v52  ;;  %v2767_v45 = vpop.f32.mrb[29].mxu1  ;;  %v3240_v37 = vld [vmem:[%s4556_s10] ss:$0 sm:$0xff] }
 0x699   : > { %v2768_v46 = vadd.f32 %v3235_v52, %v2767_v45  ;;  %v3579_v52 = vpack.c.bf16 %v2939_v51, %v2938_v63 }
 0x69a   : > { %v2777_v25 = vadd.f32 %v2773_v38, %v3980_v35 }
 0x69b   : > { %v2776_v29 = vadd.f32 %v2768_v46, %v3976_v33  ;;  %v2822_v33 = vld [vmem:[%s4555_s9] sm:$0xff]  ;;  %3580 = vmatprep.subr.bf16.mxu0 %v3579_v52 }
 0x69c   : > { %v2783_v12 = vsel %vm481_vm0, %v2777_v25, 0.0  ;;  %v3543_v34 = vpack.c.bf16 %v2823_v56, %v2822_v33  ;;  %3582 = vmatpush3.bf16.msra.mxu0 %v3579_v52 }
 0x69d   : > { %2784 = vadd.xlane.f32.xlu1 %v2783_v12  ;;  %v2780_v21 = vsel %vm481_vm0, %v2776_v29, 0.0 }
 0x69e   : > { %2781 = vadd.xlane.f32.xlu0 %v2780_v21  ;;  %3544 = vmatprep.subr.bf16.mxu1 %v3543_v34 }
 0x69f   : > { %3546 = vmatpush3.bf16.msra.mxu1 %v3543_v34 }
 0x6a0   : > { %3548 = vmatprep.subr.bf16.mxu1 %v3547_v31 }
 0x6a3   : > { %3550 = vmatpush3.bf16.msra.mxu1 %v3547_v31 }
 0x72a   : > { %v2785_v42 = vpop.xlane.xlu1 %2784 }
 0x72b   : > { %v2787_v44 = vmul.f32 0.03125, %v2785_v42  ;;  %v2782_v48 = vpop.xlane.xlu0 %2781 }
 0x72c   : > { %v2786_v23 = vmul.f32 0.03125, %v2782_v48 }
 0x72d   : > { %v2789_v50 = vsub.f32 %v2777_v25, %v2787_v44 }
 0x72e   : > { %v2788_v41 = vsub.f32 %v2776_v29, %v2786_v23 }
 0x72f   : > { %v2791_v59 = vmul.f32 %v2789_v50, %v2789_v50 }
 0x730   : > { %v2790_v39 = vmul.f32 %v2788_v41, %v2788_v41 }
 0x731   : > { %v2795_v35 = vsel %vm481_vm0, %v2791_v59, 0.0 }
 0x732   : > { %v2792_v53 = vsel %vm481_vm0, %v2790_v39, 0.0 }
 0x733   : > { %2793 = vadd.xlane.f32.xlu0 %v2792_v53  ;;  %v3243_v53 = vld [vmem:[%s4558_s12] ss:$0 sm:$0xff] }
 0x737   : > { %2796 = vadd.xlane.f32.xlu0 %v2795_v35 }
 0x7c0   : > { %v2794_v5 = vpop.xlane.xlu0 %2793 }
 0x7c1   : > { %v2798_v6 = vmul.f32 0.03125, %v2794_v5 }
 0x7c3   : > { %v2800_v7 = vadd.f32 1e-05, %v2798_v6 }
 0x7c4   : > { %v2797_v11 = vpop.xlane.xlu0 %2796 }
 0x7c5   : > { %3725 = vrsqrt.f32 %v2800_v7  ;;  %v2799_v54 = vmul.f32 0.03125, %v2797_v11 }
 0x7c7   : > { %v2801_v13 = vadd.f32 1e-05, %v2799_v54 }
 0x7c9   : > { %3727 = vrsqrt.f32 %v2801_v13 }
 0x7cf   : > { %v3726_v16 = vpop.eup %3725 }
 0x7d0   : > { %v2804_v19 = vmul.f32 %v3726_v16, %v2788_v41 }
 0x7d2   : > { %v2812_v36 = vmul.f32 %v3238_v17, %v2804_v19 }
 0x7d3   : > { %v3728_v9 = vpop.eup %3727 }
 0x7d4   : > { %v2805_v20 = vmul.f32 %v3728_v9, %v2789_v50  ;;  %v2820_v58 = vadd.f32 %v3239_v15, %v2812_v36 }
 0x7d6   : > { %v2813_v22 = vmul.f32 %v3238_v17, %v2805_v20  ;;  %3489 = vmatprep.mubr.msk.f32.mxu1 %vm481_vm0, %v2820_v58 }
 0x7d8   : > { %v2821_v57 = vadd.f32 %v3239_v15, %v2813_v22 }
 0x7da   : > { %3490 = vmatmul.mubr.msk.f32.vlgmr.msra.gmra.mrb[30].mxu1 %vm481_vm0, %v2821_v57 }
 0x8ad   : > { %v3491_v38 = vpop.f32.mrb[30].mxu1 }
 0x8ae   : > { %v2911_v45 = vadd.f32 %v3491_v38, %v3240_v37  ;;  %v2905_v46 = vpop.f32.mrb[31].mxu1 }
 0x8af   : > { %v2906_v25 = vadd.f32 %v3240_v37, %v2905_v46 }
 0x8b0   : > { %v2917_v29 = vmul.f32 0.70710677, %v2911_v45  ;;  %v2915_v50 = vmul.f32 0.5, %v2911_v45 }
 0x8b1   : > { %v2916_v12 = vmul.f32 0.70710677, %v2906_v25  ;;  %v2914_v48 = vmul.f32 0.5, %v2906_v25 }
 0x8b2   : > { %3729 = verf.f32 %v2917_v29 }
 0x8b3   : > { %3731 = verf.f32 %v2916_v12 }
 0x8bc   : > { %v3730_v21 = vpop.eup %3729 }
 0x8bd   : > { %v3732_v42 = vpop.eup %3731  ;;  %v2921_v44 = vadd.f32 1.0, %v3730_v21 }
 0x8be   : > { %v2920_v23 = vadd.f32 1.0, %v3732_v42 }
 0x8bf   : > { %v2923_v39 = vmul.f32 %v2921_v44, %v2915_v50 }
 0x8c0   : > { %v2922_v41 = vmul.f32 %v2920_v23, %v2914_v48 }
 0x8c2   : > { %3524 = vmatprep.mubr.f32.mxu0 %v2922_v41 }
 0x8c3   : > { %3525 = vmatmul.mubr.f32.vlgmr.msra.gmra.mrb[22].mxu0 %v2923_v39 }
 0x996   : > { %v3526_v59 = vpop.f32.mrb[22].mxu0 }
 0x997   : > { %v3019_v35 = vadd.f32 %v3526_v59, %v3243_v53  ;;  %v3013_v33 = vpop.f32.mrb[23].mxu0 }
 0x998   : > { %v3014_v56 = vadd.f32 %v3243_v53, %v3013_v33 }
 0x999   : > { %v3023_v34 = vadd.f32 %v3019_v35, %v2821_v57 }
 0x99a   : > { %v3022_v60 = vadd.f32 %v3014_v56, %v2820_v58 }
 0x99b   : > { %3025 = vst.msk [vmem:[%s464_s3 + $0x8] sm:$0xff] %vm481_vm0, %v3023_v34 }
 0x99c   : > { %3024 = vst.msk [vmem:[%s464_s3] sm:$0xff] %vm481_vm0, %v3022_v60 }
 0x99d   : > { %3746 = shalt.err (!%p3743_p3)
}
 0x99e   : > { %s3747_s3 = scalar_lea.hbm %s4477_s28, 256  ;;  %s3751_s18 = scalar_lea.hbm %s4559_s13, 512 }
 0x99f   : > { %p3748_p4 = scmp.ne.s32.totalorder %s4477_s28, %s3747_s3  ;;  %p3752_p9 = scmp.lt.u32.totalorder %s4477_s28, %s4559_s13 }
 0x9a0   : > { %p3753_p10 = scmp.lt.u32.totalorder %s3751_s18, %s3747_s3  ;;  %p3755_p12 = scmp.lt.u32.totalorder %s3747_s3, %s4477_s28 }
 0x9a1   : > { %p3749_p7 = pnand %p3748_p4, %p3939_p5 }
 0x9a2   : > { %p3754_p11 = por %p3753_p10, %p3752_p9 }
 0x9a3   : > { %p3750_p8 = pneg %p3749_p7 }
 0x9a4   : > { %p3756_p13 = por %p3755_p12, %p3754_p11 }
 0x9a6   : > { %p3757_p0 = pnand %p3756_p13, %p3750_p8 }
 0x9a8   : > { %3760 = shalt.err (!%p3757_p0)
}
 0x9a9   : > { %s3818_s2 = smov 128   ;;  %s4583_s25 = smov 8  }
 0x9aa   : > { %s4584_s5 = scalar_lea.sflag [#allocation3], %s3985_s26  ;;  %s3032_s21 = scalar_lea.sflag [#allocation5], %s3985_s26 }
 0x9ab   : > { %3583 = dma.vmem_to_hbm [thread:$0]  (%p3939_p5), %s4479_s4, 256, %s4477_s28, %s4584_s5, %s3818_s2, %s3818_s2, %s4583_s25  }
 0x9ac   : > { %s4585_s1 = sshll.u32 %s3922_s17, 8  ;;  %s3077_s20 = sshll.u32 %s4019_s0, 4  ;;  %s3078_s20 = int_to_ptr.vmem [resolvable:$true] %s3077_s20 }
 0x9ad   : > { %s3060_s3 = scalar_lea.hbm %s4560_s14, %s4585_s1  ;;  %s3819_s6 = smov 256  }
 0x9ae   : > { %3584 = sst [smem:[#allocation7]] (%p3939_p5), %s3819_s6  ;;  %s3820_s5 = smov 512  }
 0x9af   : > { %3585 = sst [smem:[#allocation7 + $0x1]] (%p3939_p5), %s3820_s5  ;;  %s3821_s17 = smov 2  }
 0x9b0   : > { %3586 = sst [smem:[#allocation7 + $0x2]] (%p3939_p5), %s3821_s17  ;;  %s3822_s26 = smov 128  }
 0x9b1   : > { %3587 = sst [smem:[#allocation7 + $0x3]] (%p3939_p5), %s3822_s26  ;;  %s3823_s4 = smov 8  }
 0x9b2   : > { %3588 = sst [smem:[#allocation7 + $0x4]] (%p3939_p5), %s3822_s26  ;;  %s3824_s28 = smov [#allocation6]  }
 0x9b3   : > { %3589 = sst [smem:[#allocation7 + $0x5]] (%p3939_p5), %s3823_s4  ;;  %s3825_s0 = smov 0  }
 0x9b4   : > { %3590 = dma.general (%p3939_p5), %s3078_s20, 512, %s3060_s3, %s3032_s21, %s3824_s28, [#allocation7], %s3825_s0, 0  }
 0x9b5 PF: > { %p3600_p1 = scmp.ge.s32.totalorder %s3799_s16, 2  ;;  %s3105_s6 = sand.u32 1, %s3787_s29  }
 0x9b6   : > { %s3106_s2 = scalar_lea.sflag [#allocation3], %s3105_s6 }
 0x9b7   : > { %p3594_p2 = pnand %p3600_p1, %p3943_p6 }
 0x9b9   : > { %3778 = dma.done.wait (!%p3594_p2), %s3106_s2, 256  }
 0x9ba   : > { %3780 = vsyncadd (!%p3594_p2), %s3106_s2, 4294967040  ;;  %s3115_s25 = scalar_lea.sflag [#allocation5], %s3105_s6 }
 0x9bb   : > { %3782 = dma.done.wait (!%p3594_p2), %s3115_s25, 512  }
 0x9bc   : > { %3784 = vsyncadd (!%p3594_p2), %s3115_s25, 4294966784  ;;  %p28_p5 = scmp.ge.s32.totalorder %s3926_s19, 4   ;;  %s4586_s29 = smov %s3791_s30 }
 0x9bd   : > { %s4587_s30 = smov %s3795_s15  ;;  %s4588_s15 = smov %s3937_s22 }
 0x9be   : > { %s4589_s16 = smov %s3926_s19  ;;  %30 = sbr.rel (!%p28_p5) target bundleno = 13 (0xd), region = 130 }
 0x9c5   :  { %3120 = vsyncpa [#allocation3], 1 }
 0x9c6   :  { %3122 = vsyncpa [#allocation3 + $0x1], 1 }
 0x9c7   :  { %3123 = vsyncpa [#allocation5], 1 }
 0x9c8   :  { %3125 = vsyncpa [#allocation5 + $0x1], 1 }

</bundles_post_ra>
